<compile_context>
chip_gen: v5e
topology: v5e:2x2
jax: 0.10.0
libtpu: 0.0.40
codegen_flags: <defaults>
</compile_context>

<pallas_src>
import functools

import jax
import jax.numpy as jnp
from jax import lax
from jax.experimental import pallas as pl
from jax.experimental.pallas import tpu as pltpu


def _invnet_kernel(x_ref, em_hbm, label_ref, alpha_ref,      # inputs
                   loss_ref, em_out_hbm,                      # outputs (em_out aliases em)
                   em_vmem, dma_sem,                          # scratch
                   *, beta, knn):
    B, Dp = x_ref.shape
    C = em_vmem.shape[0]

    # ---- start the full bank DMA HBM -> VMEM (needed whole for the logits matmul) ----
    # TODO(synk): at production bank sizes (C ~ dataset size, D 512-2048) tile the
    # C axis with a grid + online LSE / streaming top-k instead of one VMEM copy.
    bank_cp = pltpu.make_async_copy(em_hbm, em_vmem, dma_sem.at[B])
    bank_cp.start()

    # ---- independent prework while the bank DMA is in flight ---------------------
    # fold 1/beta into the small (B, Dp) operand; bf16 for the MXU
    xb = (x_ref[...] * (1.0 / beta)).astype(jnp.bfloat16)

    # labels as a (B, 1) vector operand, rebuilt from the SMEM copy
    row = lax.broadcasted_iota(jnp.int32, (B, 1), 0)
    labels = jnp.zeros((B, 1), jnp.int32)
    for i in range(B):                                        # B is tiny & static
        labels = jnp.where(row == i, label_ref[i], labels)

    col = lax.broadcasted_iota(jnp.int32, (B, C), 1)
    is_label = col == labels

    bank_cp.wait()

    # ---- logits = (inputs / beta) @ em^T   (bf16 operands, f32 accumulation) -----
    eb = em_vmem[...].astype(jnp.bfloat16)
    logits = lax.dot_general(xb, eb, (((1,), (1,)), ((), ())),
                             preferred_element_type=jnp.float32)           # (B, C)

    # ---- log-softmax statistics ---------------------------------------------------
    m = jnp.max(logits, axis=1, keepdims=True)                             # (B, 1)
    lse = m + jnp.log(jnp.sum(jnp.exp(logits - m), axis=1, keepdims=True)) # (B, 1)
    logit_label = jnp.sum(jnp.where(is_label, logits, 0.0), axis=1, keepdims=True)

    # ---- iterative top-k (== torch.topk, ties to lowest index) -------------------
    # Accumulate the selected logits directly; log_softmax is monotone per row, so
    # sum_topk(logp) = sum_topk(logits) - knn * lse.  No (B, C) mask buffer needed.
    neg = jnp.finfo(jnp.float32).min
    work = logits
    topk_sum = jnp.zeros((B, 1), jnp.float32)
    label_in_topk = jnp.zeros((B, 1), jnp.float32)
    for _ in range(knn):
        row_max = jnp.max(work, axis=1, keepdims=True)
        is_max = work == row_max
        idx = jnp.min(jnp.where(is_max, col, C), axis=1, keepdims=True)
        topk_sum = topk_sum + row_max
        label_in_topk = jnp.where(idx == labels, 1.0, label_in_topk)
        work = jnp.where(col == idx, neg, work)

    # loss_row = -(2*sum_topk logp + 3*logp_label - 2*logp_label*[label in topk])
    logp_label = logit_label - lse
    per_row = -(2.0 * (topk_sum - knn * lse)
                + (3.0 - 2.0 * label_in_topk) * logp_label)                # (B, 1)
    loss_ref[...] = jnp.sum(per_row, axis=0, keepdims=True) * (1.0 / B)    # (1, 1)

    # ---- sequential memory-bank update on the VMEM copy ---------------------------
    a = alpha_ref[0]                                          # alpha * epoch

    def body(i, carry):
        y = label_ref[i]                                      # scalar label (SMEM)
        xi = x_ref[pl.ds(i, 1), :]                            # (1, Dp)
        old = em_vmem[pl.ds(y, 1), :]                         # (1, Dp)
        new = a * old + (1.0 - a) * xi
        # NOTE: like the PyTorch code, a zero-norm row would produce inf/nan here.
        new = new * lax.rsqrt(jnp.sum(new * new, keepdims=True))
        em_vmem[pl.ds(y, 1), :] = new
        return carry

    lax.fori_loop(0, B, body, 0, unroll=True)

    # ---- write back ONLY the B touched rows (duplicates write identical data) -----
    for i in range(B):
        y = label_ref[i]
        pltpu.make_async_copy(em_vmem.at[pl.ds(y, 1), :],
                              em_out_hbm.at[pl.ds(y, 1), :],
                              dma_sem.at[i]).start()
    for i in range(B):
        y = label_ref[i]
        pltpu.make_async_copy(em_vmem.at[pl.ds(y, 1), :],
                              em_out_hbm.at[pl.ds(y, 1), :],
                              dma_sem.at[i]).wait()


@functools.partial(jax.jit, static_argnames=("beta", "knn", "alpha", "epoch"))
def invnet_forward(inputs, em, label, *, beta, knn, alpha, epoch):
    """Returns (loss, updated memory bank)."""
    B, D = inputs.shape
    C = em.shape[0]
    Dp = ((D + 127) // 128) * 128            # lane-dense feature dim (pad to 128)

    x_pad = jnp.zeros((B, Dp), jnp.float32).at[:, :D].set(inputs.astype(jnp.float32))
    em_pad = jnp.zeros((C, Dp), jnp.float32).at[:, :D].set(em.astype(jnp.float32))
    label = label.astype(jnp.int32)
    alpha_eff = jnp.asarray([alpha * epoch], dtype=jnp.float32)

    kernel = functools.partial(_invnet_kernel, beta=float(beta), knn=int(knn))
    loss, em_new = pl.pallas_call(
        kernel,
        out_shape=(jax.ShapeDtypeStruct((1, 1), jnp.float32),
                   jax.ShapeDtypeStruct((C, Dp), jnp.float32)),
        in_specs=[
            pl.BlockSpec(memory_space=pltpu.MemorySpace.VMEM),   # inputs (B, Dp)
            pl.BlockSpec(memory_space=pl.ANY),                   # em bank (C, Dp), stays in HBM
            pl.BlockSpec(memory_space=pltpu.MemorySpace.SMEM),   # labels (B,)
            pl.BlockSpec(memory_space=pltpu.MemorySpace.SMEM),   # alpha*epoch (1,)
        ],
        out_specs=(
            pl.BlockSpec(memory_space=pltpu.MemorySpace.VMEM),   # loss (1, 1)
            pl.BlockSpec(memory_space=pl.ANY),                   # em_new (aliased with em)
        ),
        scratch_shapes=[
            pltpu.VMEM((C, Dp), jnp.float32),                    # single bank copy in VMEM
            pltpu.SemaphoreType.DMA((B + 1,)),                   # B row write-backs + bank load
        ],
        input_output_aliases={1: 1},                             # em -> em_new (donated, no 2nd HBM buffer)
    )(x_pad, em_pad, label, alpha_eff)
    return loss[0, 0], em_new[:, :D]


def ref_forward(inputs, em, label, *, beta, knn, alpha, epoch):
    """Pure-JAX f32 reference mirroring the PyTorch forward."""
    a = alpha * epoch
    logits = (inputs @ em.T) / beta
    logp = jax.nn.log_softmax(logits, axis=1)
    B, _ = logits.shape
    _, topk = lax.top_k(logits, knn)
    mask = jnp.zeros_like(logits)
    mask = mask.at[jnp.arange(B)[:, None], topk].set(2.0)
    mask = mask.at[jnp.arange(B), label].set(3.0)
    loss = (-(mask * logp).sum(axis=1)).mean()
    em_new = em
    for i in range(B):
        y = label[i]
        row = a * em_new[y] + (1.0 - a) * inputs[i]
        row = row / jnp.linalg.norm(row)
        em_new = em_new.at[y].set(row)
    return loss, em_new


if __name__ == "__main__":
    # Small, module-consistent shapes: B samples, D=num_features, C=num_classes.
    B, D, C = 8, 32, 128
    beta, knn, alpha, epoch = 0.05, 6, 0.01, 3

    key = jax.random.PRNGKey(0)
    k1, k2, k3 = jax.random.split(key, 3)
    inputs = jax.random.normal(k1, (B, D), dtype=jnp.float32)
    # nn.Parameter(torch.zeros(C, D)) in __init__; synthetic deterministic init
    # (row-normalized random) so top-k / softmax are well defined and tie-free.
    em = jax.random.normal(k2, (C, D), dtype=jnp.float32)
    em = em / jnp.linalg.norm(em, axis=1, keepdims=True)
    label = jax.random.randint(k3, (B,), 0, C, dtype=jnp.int32)

    loss, em_new = invnet_forward(inputs, em, label, beta=beta, knn=knn,
                                  alpha=alpha, epoch=epoch)
    jax.block_until_ready((loss, em_new))

    loss_r, em_r = ref_forward(inputs, em, label, beta=beta, knn=knn,
                               alpha=alpha, epoch=epoch)
    # bf16 MXU operands leave ~1e-3 relative error in the logits-derived loss;
    # the bank update path is pure f32 and stays tight.
    assert jnp.allclose(loss, loss_r, rtol=1e-2, atol=1e-2), (loss, loss_r)
    assert jnp.allclose(em_new, em_r, rtol=2e-3, atol=2e-3)
    print("KERNEL_OK")
</pallas_src>

<mosaic_0001>
module attributes {stable_mosaic.version = 11 : i64} {
  func.func @_invnet_kernel(%arg0: memref<8x128xf32, #tpu.memory_space<vmem>>, %arg1: memref<128x128xf32, #tpu.memory_space<any>>, %arg2: memref<8xi32, #tpu.memory_space<smem>>, %arg3: memref<1xf32, #tpu.memory_space<smem>>, %arg4: memref<1x1xf32, #tpu.memory_space<vmem>>, %arg5: memref<128x128xf32, #tpu.memory_space<any>>, %arg6: memref<128x128xf32, #tpu.memory_space<vmem>>, %arg7: memref<9x!tpu.dma_semaphore, #tpu.memory_space<semaphore_mem>>) attributes {dimension_semantics = [], scalar_prefetch = 0 : i64, scratch_operands = 2 : i64, tpu.core_type = #tpu.core_type<tc>} {
    %c8_i32 = arith.constant 8 : i32
    %0 = tpu.memref_slice %arg7[%c8_i32] : memref<9x!tpu.dma_semaphore, #tpu.memory_space<semaphore_mem>> -> memref<1x!tpu.dma_semaphore, #tpu.memory_space<semaphore_mem>>
    %1 = tpu.memref_squeeze %0 : memref<1x!tpu.dma_semaphore, #tpu.memory_space<semaphore_mem>> -> memref<!tpu.dma_semaphore, #tpu.memory_space<semaphore_mem>>
    tpu.enqueue_dma source(%arg1 : memref<128x128xf32, #tpu.memory_space<any>>) target(%arg6 : memref<128x128xf32, #tpu.memory_space<vmem>>) target_semaphore(%1 : memref<!tpu.dma_semaphore, #tpu.memory_space<semaphore_mem>>)
    %c0 = arith.constant 0 : index
    %c0_0 = arith.constant 0 : index
    %2 = vector.load %arg0[%c0, %c0_0] : memref<8x128xf32, #tpu.memory_space<vmem>>, vector<8x128xf32>
    %cst = arith.constant 2.000000e+01 : f32
    %3 = vector.broadcast %cst : f32 to vector<8x128xf32>
    %4 = arith.mulf %2, %3 : vector<8x128xf32>
    %5 = arith.truncf %4 : vector<8x128xf32> to vector<8x128xbf16>
    %6 = tpu.iota {dimensions = array<i32: 0>} : vector<8x1xi32>
    %c0_i32 = arith.constant 0 : i32
    %7 = vector.broadcast %c0_i32 : i32 to vector<8x1xi32>
    %c0_i32_1 = arith.constant 0 : i32
    %8 = vector.broadcast %c0_i32_1 : i32 to vector<8x1xi32>
    %9 = arith.cmpi eq, %6, %8 : vector<8x1xi32>
    %c0_2 = arith.constant 0 : index
    %10 = memref.load %arg2[%c0_2] : memref<8xi32, #tpu.memory_space<smem>>
    %11 = vector.broadcast %10 : i32 to vector<8x1xi32>
    %12 = arith.select %9, %11, %7 : vector<8x1xi1>, vector<8x1xi32>
    %c1_i32 = arith.constant 1 : i32
    %13 = vector.broadcast %c1_i32 : i32 to vector<8x1xi32>
    %14 = arith.cmpi eq, %6, %13 : vector<8x1xi32>
    %c1 = arith.constant 1 : index
    %15 = memref.load %arg2[%c1] : memref<8xi32, #tpu.memory_space<smem>>
    %16 = vector.broadcast %15 : i32 to vector<8x1xi32>
    %17 = arith.select %14, %16, %12 : vector<8x1xi1>, vector<8x1xi32>
    %c2_i32 = arith.constant 2 : i32
    %18 = vector.broadcast %c2_i32 : i32 to vector<8x1xi32>
    %19 = arith.cmpi eq, %6, %18 : vector<8x1xi32>
    %c2 = arith.constant 2 : index
    %20 = memref.load %arg2[%c2] : memref<8xi32, #tpu.memory_space<smem>>
    %21 = vector.broadcast %20 : i32 to vector<8x1xi32>
    %22 = arith.select %19, %21, %17 : vector<8x1xi1>, vector<8x1xi32>
    %c3_i32 = arith.constant 3 : i32
    %23 = vector.broadcast %c3_i32 : i32 to vector<8x1xi32>
    %24 = arith.cmpi eq, %6, %23 : vector<8x1xi32>
    %c3 = arith.constant 3 : index
    %25 = memref.load %arg2[%c3] : memref<8xi32, #tpu.memory_space<smem>>
    %26 = vector.broadcast %25 : i32 to vector<8x1xi32>
    %27 = arith.select %24, %26, %22 : vector<8x1xi1>, vector<8x1xi32>
    %c4_i32 = arith.constant 4 : i32
    %28 = vector.broadcast %c4_i32 : i32 to vector<8x1xi32>
    %29 = arith.cmpi eq, %6, %28 : vector<8x1xi32>
    %c4 = arith.constant 4 : index
    %30 = memref.load %arg2[%c4] : memref<8xi32, #tpu.memory_space<smem>>
    %31 = vector.broadcast %30 : i32 to vector<8x1xi32>
    %32 = arith.select %29, %31, %27 : vector<8x1xi1>, vector<8x1xi32>
    %c5_i32 = arith.constant 5 : i32
    %33 = vector.broadcast %c5_i32 : i32 to vector<8x1xi32>
    %34 = arith.cmpi eq, %6, %33 : vector<8x1xi32>
    %c5 = arith.constant 5 : index
    %35 = memref.load %arg2[%c5] : memref<8xi32, #tpu.memory_space<smem>>
    %36 = vector.broadcast %35 : i32 to vector<8x1xi32>
    %37 = arith.select %34, %36, %32 : vector<8x1xi1>, vector<8x1xi32>
    %c6_i32 = arith.constant 6 : i32
    %38 = vector.broadcast %c6_i32 : i32 to vector<8x1xi32>
    %39 = arith.cmpi eq, %6, %38 : vector<8x1xi32>
    %c6 = arith.constant 6 : index
    %40 = memref.load %arg2[%c6] : memref<8xi32, #tpu.memory_space<smem>>
    %41 = vector.broadcast %40 : i32 to vector<8x1xi32>
    %42 = arith.select %39, %41, %37 : vector<8x1xi1>, vector<8x1xi32>
    %c7_i32 = arith.constant 7 : i32
    %43 = vector.broadcast %c7_i32 : i32 to vector<8x1xi32>
    %44 = arith.cmpi eq, %6, %43 : vector<8x1xi32>
    %c7 = arith.constant 7 : index
    %45 = memref.load %arg2[%c7] : memref<8xi32, #tpu.memory_space<smem>>
    %46 = vector.broadcast %45 : i32 to vector<8x1xi32>
    %47 = arith.select %44, %46, %42 : vector<8x1xi1>, vector<8x1xi32>
    %48 = tpu.iota {dimensions = array<i32: 1>} : vector<8x128xi32>
    %49 = vector.broadcast %47 : vector<8x1xi32> to vector<8x128xi32>
    %50 = arith.cmpi eq, %48, %49 : vector<8x128xi32>
    %c8_i32_3 = arith.constant 8 : i32
    %51 = tpu.memref_slice %arg7[%c8_i32_3] : memref<9x!tpu.dma_semaphore, #tpu.memory_space<semaphore_mem>> -> memref<1x!tpu.dma_semaphore, #tpu.memory_space<semaphore_mem>>
    %52 = tpu.memref_squeeze %51 : memref<1x!tpu.dma_semaphore, #tpu.memory_space<semaphore_mem>> -> memref<!tpu.dma_semaphore, #tpu.memory_space<semaphore_mem>>
    tpu.wait_dma2 semaphore(%52 : memref<!tpu.dma_semaphore, #tpu.memory_space<semaphore_mem>>) src(%arg1 : memref<128x128xf32, #tpu.memory_space<any>>) dst(%arg6 : memref<128x128xf32, #tpu.memory_space<vmem>>)
    %c0_4 = arith.constant 0 : index
    %c0_5 = arith.constant 0 : index
    %53 = vector.load %arg6[%c0_4, %c0_5] : memref<128x128xf32, #tpu.memory_space<vmem>>, vector<128x128xf32>
    %54 = arith.truncf %53 : vector<128x128xf32> to vector<128x128xbf16>
    %cst_6 = arith.constant dense<0.000000e+00> : vector<8x128xf32>
    %55 = tpu.matmul %5, %54, %cst_6 {dimension_numbers = #tpu.dot_dimension_numbers<[1], [1], [0], [0], [0, 0, 1, 0], [], []>} : vector<8x128xbf16>, vector<128x128xbf16>, vector<8x128xf32> -> vector<8x128xf32>
    %cst_7 = arith.constant dense<0xFF800000> : vector<8xf32>
    %56 = vector.multi_reduction <maximumf>, %55, %cst_7 [1] : vector<8x128xf32> to vector<8xf32>
    %57 = vector.shape_cast %56 : vector<8xf32> to vector<8x1xf32>
    %58 = vector.broadcast %57 : vector<8x1xf32> to vector<8x128xf32>
    %59 = arith.subf %55, %58 : vector<8x128xf32>
    %60 = math.exp %59 : vector<8x128xf32>
    %cst_8 = arith.constant dense<0.000000e+00> : vector<8xf32>
    %61 = vector.multi_reduction <add>, %60, %cst_8 [1] : vector<8x128xf32> to vector<8xf32>
    %62 = vector.shape_cast %61 : vector<8xf32> to vector<8x1xf32>
    %63 = math.log %62 : vector<8x1xf32>
    %64 = arith.addf %57, %63 : vector<8x1xf32>
    %cst_9 = arith.constant 0.000000e+00 : f32
    %65 = vector.broadcast %cst_9 : f32 to vector<8x128xf32>
    %66 = arith.select %50, %55, %65 : vector<8x128xi1>, vector<8x128xf32>
    %cst_10 = arith.constant dense<0.000000e+00> : vector<8xf32>
    %67 = vector.multi_reduction <add>, %66, %cst_10 [1] : vector<8x128xf32> to vector<8xf32>
    %68 = vector.shape_cast %67 : vector<8xf32> to vector<8x1xf32>
    %cst_11 = arith.constant 0.000000e+00 : f32
    %69 = vector.broadcast %cst_11 : f32 to vector<8x1xf32>
    %cst_12 = arith.constant 0.000000e+00 : f32
    %70 = vector.broadcast %cst_12 : f32 to vector<8x1xf32>
    %cst_13 = arith.constant dense<0xFF800000> : vector<8xf32>
    %71 = vector.multi_reduction <maximumf>, %55, %cst_13 [1] : vector<8x128xf32> to vector<8xf32>
    %72 = vector.shape_cast %71 : vector<8xf32> to vector<8x1xf32>
    %73 = vector.broadcast %72 : vector<8x1xf32> to vector<8x128xf32>
    %74 = arith.cmpf oeq, %55, %73 : vector<8x128xf32>
    %c128_i32 = arith.constant 128 : i32
    %75 = vector.broadcast %c128_i32 : i32 to vector<8x128xi32>
    %76 = arith.select %74, %48, %75 : vector<8x128xi1>, vector<8x128xi32>
    %cst_14 = arith.constant dense<2147483647> : vector<8xi32>
    %77 = vector.multi_reduction <minsi>, %76, %cst_14 [1] : vector<8x128xi32> to vector<8xi32>
    %78 = vector.shape_cast %77 : vector<8xi32> to vector<8x1xi32>
    %79 = arith.addf %69, %72 : vector<8x1xf32>
    %80 = arith.cmpi eq, %78, %47 : vector<8x1xi32>
    %cst_15 = arith.constant 1.000000e+00 : f32
    %81 = vector.broadcast %cst_15 : f32 to vector<8x1xf32>
    %82 = arith.select %80, %81, %70 : vector<8x1xi1>, vector<8x1xf32>
    %83 = vector.broadcast %78 : vector<8x1xi32> to vector<8x128xi32>
    %84 = arith.cmpi eq, %48, %83 : vector<8x128xi32>
    %cst_16 = arith.constant -3.40282347E+38 : f32
    %85 = vector.broadcast %cst_16 : f32 to vector<8x128xf32>
    %86 = arith.select %84, %85, %55 : vector<8x128xi1>, vector<8x128xf32>
    %cst_17 = arith.constant dense<0xFF800000> : vector<8xf32>
    %87 = vector.multi_reduction <maximumf>, %86, %cst_17 [1] : vector<8x128xf32> to vector<8xf32>
    %88 = vector.shape_cast %87 : vector<8xf32> to vector<8x1xf32>
    %89 = vector.broadcast %88 : vector<8x1xf32> to vector<8x128xf32>
    %90 = arith.cmpf oeq, %86, %89 : vector<8x128xf32>
    %c128_i32_18 = arith.constant 128 : i32
    %91 = vector.broadcast %c128_i32_18 : i32 to vector<8x128xi32>
    %92 = arith.select %90, %48, %91 : vector<8x128xi1>, vector<8x128xi32>
    %cst_19 = arith.constant dense<2147483647> : vector<8xi32>
    %93 = vector.multi_reduction <minsi>, %92, %cst_19 [1] : vector<8x128xi32> to vector<8xi32>
    %94 = vector.shape_cast %93 : vector<8xi32> to vector<8x1xi32>
    %95 = arith.addf %79, %88 : vector<8x1xf32>
    %96 = arith.cmpi eq, %94, %47 : vector<8x1xi32>
    %cst_20 = arith.constant 1.000000e+00 : f32
    %97 = vector.broadcast %cst_20 : f32 to vector<8x1xf32>
    %98 = arith.select %96, %97, %82 : vector<8x1xi1>, vector<8x1xf32>
    %99 = vector.broadcast %94 : vector<8x1xi32> to vector<8x128xi32>
    %100 = arith.cmpi eq, %48, %99 : vector<8x128xi32>
    %cst_21 = arith.constant -3.40282347E+38 : f32
    %101 = vector.broadcast %cst_21 : f32 to vector<8x128xf32>
    %102 = arith.select %100, %101, %86 : vector<8x128xi1>, vector<8x128xf32>
    %cst_22 = arith.constant dense<0xFF800000> : vector<8xf32>
    %103 = vector.multi_reduction <maximumf>, %102, %cst_22 [1] : vector<8x128xf32> to vector<8xf32>
    %104 = vector.shape_cast %103 : vector<8xf32> to vector<8x1xf32>
    %105 = vector.broadcast %104 : vector<8x1xf32> to vector<8x128xf32>
    %106 = arith.cmpf oeq, %102, %105 : vector<8x128xf32>
    %c128_i32_23 = arith.constant 128 : i32
    %107 = vector.broadcast %c128_i32_23 : i32 to vector<8x128xi32>
    %108 = arith.select %106, %48, %107 : vector<8x128xi1>, vector<8x128xi32>
    %cst_24 = arith.constant dense<2147483647> : vector<8xi32>
    %109 = vector.multi_reduction <minsi>, %108, %cst_24 [1] : vector<8x128xi32> to vector<8xi32>
    %110 = vector.shape_cast %109 : vector<8xi32> to vector<8x1xi32>
    %111 = arith.addf %95, %104 : vector<8x1xf32>
    %112 = arith.cmpi eq, %110, %47 : vector<8x1xi32>
    %cst_25 = arith.constant 1.000000e+00 : f32
    %113 = vector.broadcast %cst_25 : f32 to vector<8x1xf32>
    %114 = arith.select %112, %113, %98 : vector<8x1xi1>, vector<8x1xf32>
    %115 = vector.broadcast %110 : vector<8x1xi32> to vector<8x128xi32>
    %116 = arith.cmpi eq, %48, %115 : vector<8x128xi32>
    %cst_26 = arith.constant -3.40282347E+38 : f32
    %117 = vector.broadcast %cst_26 : f32 to vector<8x128xf32>
    %118 = arith.select %116, %117, %102 : vector<8x128xi1>, vector<8x128xf32>
    %cst_27 = arith.constant dense<0xFF800000> : vector<8xf32>
    %119 = vector.multi_reduction <maximumf>, %118, %cst_27 [1] : vector<8x128xf32> to vector<8xf32>
    %120 = vector.shape_cast %119 : vector<8xf32> to vector<8x1xf32>
    %121 = vector.broadcast %120 : vector<8x1xf32> to vector<8x128xf32>
    %122 = arith.cmpf oeq, %118, %121 : vector<8x128xf32>
    %c128_i32_28 = arith.constant 128 : i32
    %123 = vector.broadcast %c128_i32_28 : i32 to vector<8x128xi32>
    %124 = arith.select %122, %48, %123 : vector<8x128xi1>, vector<8x128xi32>
    %cst_29 = arith.constant dense<2147483647> : vector<8xi32>
    %125 = vector.multi_reduction <minsi>, %124, %cst_29 [1] : vector<8x128xi32> to vector<8xi32>
    %126 = vector.shape_cast %125 : vector<8xi32> to vector<8x1xi32>
    %127 = arith.addf %111, %120 : vector<8x1xf32>
    %128 = arith.cmpi eq, %126, %47 : vector<8x1xi32>
    %cst_30 = arith.constant 1.000000e+00 : f32
    %129 = vector.broadcast %cst_30 : f32 to vector<8x1xf32>
    %130 = arith.select %128, %129, %114 : vector<8x1xi1>, vector<8x1xf32>
    %131 = vector.broadcast %126 : vector<8x1xi32> to vector<8x128xi32>
    %132 = arith.cmpi eq, %48, %131 : vector<8x128xi32>
    %cst_31 = arith.constant -3.40282347E+38 : f32
    %133 = vector.broadcast %cst_31 : f32 to vector<8x128xf32>
    %134 = arith.select %132, %133, %118 : vector<8x128xi1>, vector<8x128xf32>
    %cst_32 = arith.constant dense<0xFF800000> : vector<8xf32>
    %135 = vector.multi_reduction <maximumf>, %134, %cst_32 [1] : vector<8x128xf32> to vector<8xf32>
    %136 = vector.shape_cast %135 : vector<8xf32> to vector<8x1xf32>
    %137 = vector.broadcast %136 : vector<8x1xf32> to vector<8x128xf32>
    %138 = arith.cmpf oeq, %134, %137 : vector<8x128xf32>
    %c128_i32_33 = arith.constant 128 : i32
    %139 = vector.broadcast %c128_i32_33 : i32 to vector<8x128xi32>
    %140 = arith.select %138, %48, %139 : vector<8x128xi1>, vector<8x128xi32>
    %cst_34 = arith.constant dense<2147483647> : vector<8xi32>
    %141 = vector.multi_reduction <minsi>, %140, %cst_34 [1] : vector<8x128xi32> to vector<8xi32>
    %142 = vector.shape_cast %141 : vector<8xi32> to vector<8x1xi32>
    %143 = arith.addf %127, %136 : vector<8x1xf32>
    %144 = arith.cmpi eq, %142, %47 : vector<8x1xi32>
    %cst_35 = arith.constant 1.000000e+00 : f32
    %145 = vector.broadcast %cst_35 : f32 to vector<8x1xf32>
    %146 = arith.select %144, %145, %130 : vector<8x1xi1>, vector<8x1xf32>
    %147 = vector.broadcast %142 : vector<8x1xi32> to vector<8x128xi32>
    %148 = arith.cmpi eq, %48, %147 : vector<8x128xi32>
    %cst_36 = arith.constant -3.40282347E+38 : f32
    %149 = vector.broadcast %cst_36 : f32 to vector<8x128xf32>
    %150 = arith.select %148, %149, %134 : vector<8x128xi1>, vector<8x128xf32>
    %cst_37 = arith.constant dense<0xFF800000> : vector<8xf32>
    %151 = vector.multi_reduction <maximumf>, %150, %cst_37 [1] : vector<8x128xf32> to vector<8xf32>
    %152 = vector.shape_cast %151 : vector<8xf32> to vector<8x1xf32>
    %153 = vector.broadcast %152 : vector<8x1xf32> to vector<8x128xf32>
    %154 = arith.cmpf oeq, %150, %153 : vector<8x128xf32>
    %c128_i32_38 = arith.constant 128 : i32
    %155 = vector.broadcast %c128_i32_38 : i32 to vector<8x128xi32>
    %156 = arith.select %154, %48, %155 : vector<8x128xi1>, vector<8x128xi32>
    %cst_39 = arith.constant dense<2147483647> : vector<8xi32>
    %157 = vector.multi_reduction <minsi>, %156, %cst_39 [1] : vector<8x128xi32> to vector<8xi32>
    %158 = vector.shape_cast %157 : vector<8xi32> to vector<8x1xi32>
    %159 = arith.addf %143, %152 : vector<8x1xf32>
    %160 = arith.cmpi eq, %158, %47 : vector<8x1xi32>
    %cst_40 = arith.constant 1.000000e+00 : f32
    %161 = vector.broadcast %cst_40 : f32 to vector<8x1xf32>
    %162 = arith.select %160, %161, %146 : vector<8x1xi1>, vector<8x1xf32>
    %163 = arith.subf %68, %64 : vector<8x1xf32>
    %cst_41 = arith.constant 6.000000e+00 : f32
    %164 = vector.broadcast %cst_41 : f32 to vector<8x1xf32>
    %165 = arith.mulf %164, %64 : vector<8x1xf32>
    %166 = arith.subf %159, %165 : vector<8x1xf32>
    %cst_42 = arith.constant 2.000000e+00 : f32
    %167 = vector.broadcast %cst_42 : f32 to vector<8x1xf32>
    %168 = arith.mulf %167, %166 : vector<8x1xf32>
    %cst_43 = arith.constant 2.000000e+00 : f32
    %169 = vector.broadcast %cst_43 : f32 to vector<8x1xf32>
    %170 = arith.mulf %169, %162 : vector<8x1xf32>
    %cst_44 = arith.constant 3.000000e+00 : f32
    %171 = vector.broadcast %cst_44 : f32 to vector<8x1xf32>
    %172 = arith.subf %171, %170 : vector<8x1xf32>
    %173 = arith.mulf %172, %163 : vector<8x1xf32>
    %174 = arith.addf %168, %173 : vector<8x1xf32>
    %cst_45 = arith.constant 0.000000e+00 : f32
    %175 = vector.broadcast %cst_45 : f32 to vector<8x1xf32>
    %176 = arith.subf %175, %174 : vector<8x1xf32>
    %cst_46 = arith.constant dense<0.000000e+00> : vector<1xf32>
    %177 = vector.multi_reduction <add>, %176, %cst_46 [0] : vector<8x1xf32> to vector<1xf32>
    %178 = vector.shape_cast %177 : vector<1xf32> to vector<1x1xf32>
    %cst_47 = arith.constant 1.250000e-01 : f32
    %179 = vector.broadcast %cst_47 : f32 to vector<1x1xf32>
    %180 = arith.mulf %178, %179 : vector<1x1xf32>
    %c0_48 = arith.constant 0 : index
    %c0_49 = arith.constant 0 : index
    %181 = vector.load %arg4[%c0_48, %c0_49] : memref<1x1xf32, #tpu.memory_space<vmem>>, vector<1x1xf32>
    tpu.vector_store %arg4[%c0_48, %c0_49], %180 {strides = array<i32>} : memref<1x1xf32, #tpu.memory_space<vmem>>, vector<1x1xf32>,
    %c0_50 = arith.constant 0 : index
    %182 = memref.load %arg3[%c0_50] : memref<1xf32, #tpu.memory_space<smem>>
    %c0_i32_51 = arith.constant 0 : i32
    %183 = arith.index_cast %c0_i32_51 : i32 to index
    %184 = memref.load %arg2[%183] : memref<8xi32, #tpu.memory_space<smem>>
    %185 = arith.index_cast %c0_i32_51 : i32 to index
    %c0_52 = arith.constant 0 : index
    %186 = vector.load %arg0[%185, %c0_52] : memref<8x128xf32, #tpu.memory_space<vmem>>, vector<1x128xf32>
    %187 = arith.index_cast %184 : i32 to index
    %c0_53 = arith.constant 0 : index
    %188 = vector.load %arg6[%187, %c0_53] : memref<128x128xf32, #tpu.memory_space<vmem>>, vector<1x128xf32>
    %189 = vector.broadcast %182 : f32 to vector<1x128xf32>
    %190 = arith.mulf %189, %188 : vector<1x128xf32>
    %cst_54 = arith.constant 1.000000e+00 : f32
    %191 = arith.subf %cst_54, %182 : f32
    %192 = vector.broadcast %191 : f32 to vector<1x128xf32>
    %193 = arith.mulf %192, %186 : vector<1x128xf32>
    %194 = arith.addf %190, %193 : vector<1x128xf32>
    %195 = arith.mulf %194, %194 : vector<1x128xf32>
    %196 = vector.shape_cast %195 : vector<1x128xf32> to vector<1x1x128xf32>
    %cst_55 = arith.constant dense<0.000000e+00> : vector<1xf32>
    %197 = vector.multi_reduction <add>, %196, %cst_55 [1, 2] : vector<1x1x128xf32> to vector<1xf32>
    %198 = vector.shape_cast %197 : vector<1xf32> to vector<1x1x1xf32>
    %199 = vector.extract %198[0, 0, 0] : f32 from vector<1x1x1xf32>
    %200 = vector.broadcast %199 : f32 to vector<1x1xf32>
    %201 = math.rsqrt %200 : vector<1x1xf32>
    %202 = vector.broadcast %201 : vector<1x1xf32> to vector<1x128xf32>
    %203 = arith.mulf %194, %202 : vector<1x128xf32>
    %204 = arith.index_cast %184 : i32 to index
    %c0_56 = arith.constant 0 : index
    %205 = vector.load %arg6[%204, %c0_56] : memref<128x128xf32, #tpu.memory_space<vmem>>, vector<1x128xf32>
    tpu.vector_store %arg6[%204, %c0_56], %203 {strides = array<i32>} : memref<128x128xf32, #tpu.memory_space<vmem>>, vector<1x128xf32>,
    %c1_i32_57 = arith.constant 1 : i32
    %206 = arith.index_cast %c1_i32_57 : i32 to index
    %207 = memref.load %arg2[%206] : memref<8xi32, #tpu.memory_space<smem>>
    %208 = arith.index_cast %c1_i32_57 : i32 to index
    %c0_58 = arith.constant 0 : index
    %209 = vector.load %arg0[%208, %c0_58] : memref<8x128xf32, #tpu.memory_space<vmem>>, vector<1x128xf32>
    %210 = arith.index_cast %207 : i32 to index
    %c0_59 = arith.constant 0 : index
    %211 = vector.load %arg6[%210, %c0_59] : memref<128x128xf32, #tpu.memory_space<vmem>>, vector<1x128xf32>
    %212 = vector.broadcast %182 : f32 to vector<1x128xf32>
    %213 = arith.mulf %212, %211 : vector<1x128xf32>
    %cst_60 = arith.constant 1.000000e+00 : f32
    %214 = arith.subf %cst_60, %182 : f32
    %215 = vector.broadcast %214 : f32 to vector<1x128xf32>
    %216 = arith.mulf %215, %209 : vector<1x128xf32>
    %217 = arith.addf %213, %216 : vector<1x128xf32>
    %218 = arith.mulf %217, %217 : vector<1x128xf32>
    %219 = vector.shape_cast %218 : vector<1x128xf32> to vector<1x1x128xf32>
    %cst_61 = arith.constant dense<0.000000e+00> : vector<1xf32>
    %220 = vector.multi_reduction <add>, %219, %cst_61 [1, 2] : vector<1x1x128xf32> to vector<1xf32>
    %221 = vector.shape_cast %220 : vector<1xf32> to vector<1x1x1xf32>
    %222 = vector.extract %221[0, 0, 0] : f32 from vector<1x1x1xf32>
    %223 = vector.broadcast %222 : f32 to vector<1x1xf32>
    %224 = math.rsqrt %223 : vector<1x1xf32>
    %225 = vector.broadcast %224 : vector<1x1xf32> to vector<1x128xf32>
    %226 = arith.mulf %217, %225 : vector<1x128xf32>
    %227 = arith.index_cast %207 : i32 to index
    %c0_62 = arith.constant 0 : index
    %228 = vector.load %arg6[%227, %c0_62] : memref<128x128xf32, #tpu.memory_space<vmem>>, vector<1x128xf32>
    tpu.vector_store %arg6[%227, %c0_62], %226 {strides = array<i32>} : memref<128x128xf32, #tpu.memory_space<vmem>>, vector<1x128xf32>,
    %c2_i32_63 = arith.constant 2 : i32
    %229 = arith.index_cast %c2_i32_63 : i32 to index
    %230 = memref.load %arg2[%229] : memref<8xi32, #tpu.memory_space<smem>>
    %231 = arith.index_cast %c2_i32_63 : i32 to index
    %c0_64 = arith.constant 0 : index
    %232 = vector.load %arg0[%231, %c0_64] : memref<8x128xf32, #tpu.memory_space<vmem>>, vector<1x128xf32>
    %233 = arith.index_cast %230 : i32 to index
    %c0_65 = arith.constant 0 : index
    %234 = vector.load %arg6[%233, %c0_65] : memref<128x128xf32, #tpu.memory_space<vmem>>, vector<1x128xf32>
    %235 = vector.broadcast %182 : f32 to vector<1x128xf32>
    %236 = arith.mulf %235, %234 : vector<1x128xf32>
    %cst_66 = arith.constant 1.000000e+00 : f32
    %237 = arith.subf %cst_66, %182 : f32
    %238 = vector.broadcast %237 : f32 to vector<1x128xf32>
    %239 = arith.mulf %238, %232 : vector<1x128xf32>
    %240 = arith.addf %236, %239 : vector<1x128xf32>
    %241 = arith.mulf %240, %240 : vector<1x128xf32>
    %242 = vector.shape_cast %241 : vector<1x128xf32> to vector<1x1x128xf32>
    %cst_67 = arith.constant dense<0.000000e+00> : vector<1xf32>
    %243 = vector.multi_reduction <add>, %242, %cst_67 [1, 2] : vector<1x1x128xf32> to vector<1xf32>
    %244 = vector.shape_cast %243 : vector<1xf32> to vector<1x1x1xf32>
    %245 = vector.extract %244[0, 0, 0] : f32 from vector<1x1x1xf32>
    %246 = vector.broadcast %245 : f32 to vector<1x1xf32>
    %247 = math.rsqrt %246 : vector<1x1xf32>
    %248 = vector.broadcast %247 : vector<1x1xf32> to vector<1x128xf32>
    %249 = arith.mulf %240, %248 : vector<1x128xf32>
    %250 = arith.index_cast %230 : i32 to index
    %c0_68 = arith.constant 0 : index
    %251 = vector.load %arg6[%250, %c0_68] : memref<128x128xf32, #tpu.memory_space<vmem>>, vector<1x128xf32>
    tpu.vector_store %arg6[%250, %c0_68], %249 {strides = array<i32>} : memref<128x128xf32, #tpu.memory_space<vmem>>, vector<1x128xf32>,
    %c3_i32_69 = arith.constant 3 : i32
    %252 = arith.index_cast %c3_i32_69 : i32 to index
    %253 = memref.load %arg2[%252] : memref<8xi32, #tpu.memory_space<smem>>
    %254 = arith.index_cast %c3_i32_69 : i32 to index
    %c0_70 = arith.constant 0 : index
    %255 = vector.load %arg0[%254, %c0_70] : memref<8x128xf32, #tpu.memory_space<vmem>>, vector<1x128xf32>
    %256 = arith.index_cast %253 : i32 to index
    %c0_71 = arith.constant 0 : index
    %257 = vector.load %arg6[%256, %c0_71] : memref<128x128xf32, #tpu.memory_space<vmem>>, vector<1x128xf32>
    %258 = vector.broadcast %182 : f32 to vector<1x128xf32>
    %259 = arith.mulf %258, %257 : vector<1x128xf32>
    %cst_72 = arith.constant 1.000000e+00 : f32
    %260 = arith.subf %cst_72, %182 : f32
    %261 = vector.broadcast %260 : f32 to vector<1x128xf32>
    %262 = arith.mulf %261, %255 : vector<1x128xf32>
    %263 = arith.addf %259, %262 : vector<1x128xf32>
    %264 = arith.mulf %263, %263 : vector<1x128xf32>
    %265 = vector.shape_cast %264 : vector<1x128xf32> to vector<1x1x128xf32>
    %cst_73 = arith.constant dense<0.000000e+00> : vector<1xf32>
    %266 = vector.multi_reduction <add>, %265, %cst_73 [1, 2] : vector<1x1x128xf32> to vector<1xf32>
    %267 = vector.shape_cast %266 : vector<1xf32> to vector<1x1x1xf32>
    %268 = vector.extract %267[0, 0, 0] : f32 from vector<1x1x1xf32>
    %269 = vector.broadcast %268 : f32 to vector<1x1xf32>
    %270 = math.rsqrt %269 : vector<1x1xf32>
    %271 = vector.broadcast %270 : vector<1x1xf32> to vector<1x128xf32>
    %272 = arith.mulf %263, %271 : vector<1x128xf32>
    %273 = arith.index_cast %253 : i32 to index
    %c0_74 = arith.constant 0 : index
    %274 = vector.load %arg6[%273, %c0_74] : memref<128x128xf32, #tpu.memory_space<vmem>>, vector<1x128xf32>
    tpu.vector_store %arg6[%273, %c0_74], %272 {strides = array<i32>} : memref<128x128xf32, #tpu.memory_space<vmem>>, vector<1x128xf32>,
    %c4_i32_75 = arith.constant 4 : i32
    %275 = arith.index_cast %c4_i32_75 : i32 to index
    %276 = memref.load %arg2[%275] : memref<8xi32, #tpu.memory_space<smem>>
    %277 = arith.index_cast %c4_i32_75 : i32 to index
    %c0_76 = arith.constant 0 : index
    %278 = vector.load %arg0[%277, %c0_76] : memref<8x128xf32, #tpu.memory_space<vmem>>, vector<1x128xf32>
    %279 = arith.index_cast %276 : i32 to index
    %c0_77 = arith.constant 0 : index
    %280 = vector.load %arg6[%279, %c0_77] : memref<128x128xf32, #tpu.memory_space<vmem>>, vector<1x128xf32>
    %281 = vector.broadcast %182 : f32 to vector<1x128xf32>
    %282 = arith.mulf %281, %280 : vector<1x128xf32>
    %cst_78 = arith.constant 1.000000e+00 : f32
    %283 = arith.subf %cst_78, %182 : f32
    %284 = vector.broadcast %283 : f32 to vector<1x128xf32>
    %285 = arith.mulf %284, %278 : vector<1x128xf32>
    %286 = arith.addf %282, %285 : vector<1x128xf32>
    %287 = arith.mulf %286, %286 : vector<1x128xf32>
    %288 = vector.shape_cast %287 : vector<1x128xf32> to vector<1x1x128xf32>
    %cst_79 = arith.constant dense<0.000000e+00> : vector<1xf32>
    %289 = vector.multi_reduction <add>, %288, %cst_79 [1, 2] : vector<1x1x128xf32> to vector<1xf32>
    %290 = vector.shape_cast %289 : vector<1xf32> to vector<1x1x1xf32>
    %291 = vector.extract %290[0, 0, 0] : f32 from vector<1x1x1xf32>
    %292 = vector.broadcast %291 : f32 to vector<1x1xf32>
    %293 = math.rsqrt %292 : vector<1x1xf32>
    %294 = vector.broadcast %293 : vector<1x1xf32> to vector<1x128xf32>
    %295 = arith.mulf %286, %294 : vector<1x128xf32>
    %296 = arith.index_cast %276 : i32 to index
    %c0_80 = arith.constant 0 : index
    %297 = vector.load %arg6[%296, %c0_80] : memref<128x128xf32, #tpu.memory_space<vmem>>, vector<1x128xf32>
    tpu.vector_store %arg6[%296, %c0_80], %295 {strides = array<i32>} : memref<128x128xf32, #tpu.memory_space<vmem>>, vector<1x128xf32>,
    %c5_i32_81 = arith.constant 5 : i32
    %298 = arith.index_cast %c5_i32_81 : i32 to index
    %299 = memref.load %arg2[%298] : memref<8xi32, #tpu.memory_space<smem>>
    %300 = arith.index_cast %c5_i32_81 : i32 to index
    %c0_82 = arith.constant 0 : index
    %301 = vector.load %arg0[%300, %c0_82] : memref<8x128xf32, #tpu.memory_space<vmem>>, vector<1x128xf32>
    %302 = arith.index_cast %299 : i32 to index
    %c0_83 = arith.constant 0 : index
    %303 = vector.load %arg6[%302, %c0_83] : memref<128x128xf32, #tpu.memory_space<vmem>>, vector<1x128xf32>
    %304 = vector.broadcast %182 : f32 to vector<1x128xf32>
    %305 = arith.mulf %304, %303 : vector<1x128xf32>
    %cst_84 = arith.constant 1.000000e+00 : f32
    %306 = arith.subf %cst_84, %182 : f32
    %307 = vector.broadcast %306 : f32 to vector<1x128xf32>
    %308 = arith.mulf %307, %301 : vector<1x128xf32>
    %309 = arith.addf %305, %308 : vector<1x128xf32>
    %310 = arith.mulf %309, %309 : vector<1x128xf32>
    %311 = vector.shape_cast %310 : vector<1x128xf32> to vector<1x1x128xf32>
    %cst_85 = arith.constant dense<0.000000e+00> : vector<1xf32>
    %312 = vector.multi_reduction <add>, %311, %cst_85 [1, 2] : vector<1x1x128xf32> to vector<1xf32>
    %313 = vector.shape_cast %312 : vector<1xf32> to vector<1x1x1xf32>
    %314 = vector.extract %313[0, 0, 0] : f32 from vector<1x1x1xf32>
    %315 = vector.broadcast %314 : f32 to vector<1x1xf32>
    %316 = math.rsqrt %315 : vector<1x1xf32>
    %317 = vector.broadcast %316 : vector<1x1xf32> to vector<1x128xf32>
    %318 = arith.mulf %309, %317 : vector<1x128xf32>
    %319 = arith.index_cast %299 : i32 to index
    %c0_86 = arith.constant 0 : index
    %320 = vector.load %arg6[%319, %c0_86] : memref<128x128xf32, #tpu.memory_space<vmem>>, vector<1x128xf32>
    tpu.vector_store %arg6[%319, %c0_86], %318 {strides = array<i32>} : memref<128x128xf32, #tpu.memory_space<vmem>>, vector<1x128xf32>,
    %c6_i32_87 = arith.constant 6 : i32
    %321 = arith.index_cast %c6_i32_87 : i32 to index
    %322 = memref.load %arg2[%321] : memref<8xi32, #tpu.memory_space<smem>>
    %323 = arith.index_cast %c6_i32_87 : i32 to index
    %c0_88 = arith.constant 0 : index
    %324 = vector.load %arg0[%323, %c0_88] : memref<8x128xf32, #tpu.memory_space<vmem>>, vector<1x128xf32>
    %325 = arith.index_cast %322 : i32 to index
    %c0_89 = arith.constant 0 : index
    %326 = vector.load %arg6[%325, %c0_89] : memref<128x128xf32, #tpu.memory_space<vmem>>, vector<1x128xf32>
    %327 = vector.broadcast %182 : f32 to vector<1x128xf32>
    %328 = arith.mulf %327, %326 : vector<1x128xf32>
    %cst_90 = arith.constant 1.000000e+00 : f32
    %329 = arith.subf %cst_90, %182 : f32
    %330 = vector.broadcast %329 : f32 to vector<1x128xf32>
    %331 = arith.mulf %330, %324 : vector<1x128xf32>
    %332 = arith.addf %328, %331 : vector<1x128xf32>
    %333 = arith.mulf %332, %332 : vector<1x128xf32>
    %334 = vector.shape_cast %333 : vector<1x128xf32> to vector<1x1x128xf32>
    %cst_91 = arith.constant dense<0.000000e+00> : vector<1xf32>
    %335 = vector.multi_reduction <add>, %334, %cst_91 [1, 2] : vector<1x1x128xf32> to vector<1xf32>
    %336 = vector.shape_cast %335 : vector<1xf32> to vector<1x1x1xf32>
    %337 = vector.extract %336[0, 0, 0] : f32 from vector<1x1x1xf32>
    %338 = vector.broadcast %337 : f32 to vector<1x1xf32>
    %339 = math.rsqrt %338 : vector<1x1xf32>
    %340 = vector.broadcast %339 : vector<1x1xf32> to vector<1x128xf32>
    %341 = arith.mulf %332, %340 : vector<1x128xf32>
    %342 = arith.index_cast %322 : i32 to index
    %c0_92 = arith.constant 0 : index
    %343 = vector.load %arg6[%342, %c0_92] : memref<128x128xf32, #tpu.memory_space<vmem>>, vector<1x128xf32>
    tpu.vector_store %arg6[%342, %c0_92], %341 {strides = array<i32>} : memref<128x128xf32, #tpu.memory_space<vmem>>, vector<1x128xf32>,
    %c7_i32_93 = arith.constant 7 : i32
    %344 = arith.index_cast %c7_i32_93 : i32 to index
    %345 = memref.load %arg2[%344] : memref<8xi32, #tpu.memory_space<smem>>
    %346 = arith.index_cast %c7_i32_93 : i32 to index
    %c0_94 = arith.constant 0 : index
    %347 = vector.load %arg0[%346, %c0_94] : memref<8x128xf32, #tpu.memory_space<vmem>>, vector<1x128xf32>
    %348 = arith.index_cast %345 : i32 to index
    %c0_95 = arith.constant 0 : index
    %349 = vector.load %arg6[%348, %c0_95] : memref<128x128xf32, #tpu.memory_space<vmem>>, vector<1x128xf32>
    %350 = vector.broadcast %182 : f32 to vector<1x128xf32>
    %351 = arith.mulf %350, %349 : vector<1x128xf32>
    %cst_96 = arith.constant 1.000000e+00 : f32
    %352 = arith.subf %cst_96, %182 : f32
    %353 = vector.broadcast %352 : f32 to vector<1x128xf32>
    %354 = arith.mulf %353, %347 : vector<1x128xf32>
    %355 = arith.addf %351, %354 : vector<1x128xf32>
    %356 = arith.mulf %355, %355 : vector<1x128xf32>
    %357 = vector.shape_cast %356 : vector<1x128xf32> to vector<1x1x128xf32>
    %cst_97 = arith.constant dense<0.000000e+00> : vector<1xf32>
    %358 = vector.multi_reduction <add>, %357, %cst_97 [1, 2] : vector<1x1x128xf32> to vector<1xf32>
    %359 = vector.shape_cast %358 : vector<1xf32> to vector<1x1x1xf32>
    %360 = vector.extract %359[0, 0, 0] : f32 from vector<1x1x1xf32>
    %361 = vector.broadcast %360 : f32 to vector<1x1xf32>
    %362 = math.rsqrt %361 : vector<1x1xf32>
    %363 = vector.broadcast %362 : vector<1x1xf32> to vector<1x128xf32>
    %364 = arith.mulf %355, %363 : vector<1x128xf32>
    %365 = arith.index_cast %345 : i32 to index
    %c0_98 = arith.constant 0 : index
    %366 = vector.load %arg6[%365, %c0_98] : memref<128x128xf32, #tpu.memory_space<vmem>>, vector<1x128xf32>
    tpu.vector_store %arg6[%365, %c0_98], %364 {strides = array<i32>} : memref<128x128xf32, #tpu.memory_space<vmem>>, vector<1x128xf32>,
    %c8_i32_99 = arith.constant 8 : i32
    %c0_100 = arith.constant 0 : index
    %367 = memref.load %arg2[%c0_100] : memref<8xi32, #tpu.memory_space<smem>>
    %c0_i32_101 = arith.constant 0 : i32
    %c0_i32_102 = arith.constant 0 : i32
    %368 = tpu.memref_slice %arg6[%367, %c0_i32_102] : memref<128x128xf32, #tpu.memory_space<vmem>> -> memref<1x128xf32, #tpu.memory_space<vmem>>
    %c0_i32_103 = arith.constant 0 : i32
    %369 = tpu.memref_slice %arg5[%367, %c0_i32_103] : memref<128x128xf32, #tpu.memory_space<any>> -> memref<1x128xf32, #tpu.memory_space<any>>
    %370 = tpu.memref_slice %arg7[%c0_i32_101] : memref<9x!tpu.dma_semaphore, #tpu.memory_space<semaphore_mem>> -> memref<1x!tpu.dma_semaphore, #tpu.memory_space<semaphore_mem>>
    %371 = tpu.memref_squeeze %370 : memref<1x!tpu.dma_semaphore, #tpu.memory_space<semaphore_mem>> -> memref<!tpu.dma_semaphore, #tpu.memory_space<semaphore_mem>>
    tpu.enqueue_dma source(%368 : memref<1x128xf32, #tpu.memory_space<vmem>>) target(%369 : memref<1x128xf32, #tpu.memory_space<any>>) target_semaphore(%371 : memref<!tpu.dma_semaphore, #tpu.memory_space<semaphore_mem>>)
    %c1_104 = arith.constant 1 : index
    %372 = memref.load %arg2[%c1_104] : memref<8xi32, #tpu.memory_space<smem>>
    %c1_i32_105 = arith.constant 1 : i32
    %c0_i32_106 = arith.constant 0 : i32
    %373 = tpu.memref_slice %arg6[%372, %c0_i32_106] : memref<128x128xf32, #tpu.memory_space<vmem>> -> memref<1x128xf32, #tpu.memory_space<vmem>>
    %c0_i32_107 = arith.constant 0 : i32
    %374 = tpu.memref_slice %arg5[%372, %c0_i32_107] : memref<128x128xf32, #tpu.memory_space<any>> -> memref<1x128xf32, #tpu.memory_space<any>>
    %375 = tpu.memref_slice %arg7[%c1_i32_105] : memref<9x!tpu.dma_semaphore, #tpu.memory_space<semaphore_mem>> -> memref<1x!tpu.dma_semaphore, #tpu.memory_space<semaphore_mem>>
    %376 = tpu.memref_squeeze %375 : memref<1x!tpu.dma_semaphore, #tpu.memory_space<semaphore_mem>> -> memref<!tpu.dma_semaphore, #tpu.memory_space<semaphore_mem>>
    tpu.enqueue_dma source(%373 : memref<1x128xf32, #tpu.memory_space<vmem>>) target(%374 : memref<1x128xf32, #tpu.memory_space<any>>) target_semaphore(%376 : memref<!tpu.dma_semaphore, #tpu.memory_space<semaphore_mem>>)
    %c2_108 = arith.constant 2 : index
    %377 = memref.load %arg2[%c2_108] : memref<8xi32, #tpu.memory_space<smem>>
    %c2_i32_109 = arith.constant 2 : i32
    %c0_i32_110 = arith.constant 0 : i32
    %378 = tpu.memref_slice %arg6[%377, %c0_i32_110] : memref<128x128xf32, #tpu.memory_space<vmem>> -> memref<1x128xf32, #tpu.memory_space<vmem>>
    %c0_i32_111 = arith.constant 0 : i32
    %379 = tpu.memref_slice %arg5[%377, %c0_i32_111] : memref<128x128xf32, #tpu.memory_space<any>> -> memref<1x128xf32, #tpu.memory_space<any>>
    %380 = tpu.memref_slice %arg7[%c2_i32_109] : memref<9x!tpu.dma_semaphore, #tpu.memory_space<semaphore_mem>> -> memref<1x!tpu.dma_semaphore, #tpu.memory_space<semaphore_mem>>
    %381 = tpu.memref_squeeze %380 : memref<1x!tpu.dma_semaphore, #tpu.memory_space<semaphore_mem>> -> memref<!tpu.dma_semaphore, #tpu.memory_space<semaphore_mem>>
    tpu.enqueue_dma source(%378 : memref<1x128xf32, #tpu.memory_space<vmem>>) target(%379 : memref<1x128xf32, #tpu.memory_space<any>>) target_semaphore(%381 : memref<!tpu.dma_semaphore, #tpu.memory_space<semaphore_mem>>)
    %c3_112 = arith.constant 3 : index
    %382 = memref.load %arg2[%c3_112] : memref<8xi32, #tpu.memory_space<smem>>
    %c3_i32_113 = arith.constant 3 : i32
    %c0_i32_114 = arith.constant 0 : i32
    %383 = tpu.memref_slice %arg6[%382, %c0_i32_114] : memref<128x128xf32, #tpu.memory_space<vmem>> -> memref<1x128xf32, #tpu.memory_space<vmem>>
    %c0_i32_115 = arith.constant 0 : i32
    %384 = tpu.memref_slice %arg5[%382, %c0_i32_115] : memref<128x128xf32, #tpu.memory_space<any>> -> memref<1x128xf32, #tpu.memory_space<any>>
    %385 = tpu.memref_slice %arg7[%c3_i32_113] : memref<9x!tpu.dma_semaphore, #tpu.memory_space<semaphore_mem>> -> memref<1x!tpu.dma_semaphore, #tpu.memory_space<semaphore_mem>>
    %386 = tpu.memref_squeeze %385 : memref<1x!tpu.dma_semaphore, #tpu.memory_space<semaphore_mem>> -> memref<!tpu.dma_semaphore, #tpu.memory_space<semaphore_mem>>
    tpu.enqueue_dma source(%383 : memref<1x128xf32, #tpu.memory_space<vmem>>) target(%384 : memref<1x128xf32, #tpu.memory_space<any>>) target_semaphore(%386 : memref<!tpu.dma_semaphore, #tpu.memory_space<semaphore_mem>>)
    %c4_116 = arith.constant 4 : index
    %387 = memref.load %arg2[%c4_116] : memref<8xi32, #tpu.memory_space<smem>>
    %c4_i32_117 = arith.constant 4 : i32
    %c0_i32_118 = arith.constant 0 : i32
    %388 = tpu.memref_slice %arg6[%387, %c0_i32_118] : memref<128x128xf32, #tpu.memory_space<vmem>> -> memref<1x128xf32, #tpu.memory_space<vmem>>
    %c0_i32_119 = arith.constant 0 : i32
    %389 = tpu.memref_slice %arg5[%387, %c0_i32_119] : memref<128x128xf32, #tpu.memory_space<any>> -> memref<1x128xf32, #tpu.memory_space<any>>
    %390 = tpu.memref_slice %arg7[%c4_i32_117] : memref<9x!tpu.dma_semaphore, #tpu.memory_space<semaphore_mem>> -> memref<1x!tpu.dma_semaphore, #tpu.memory_space<semaphore_mem>>
    %391 = tpu.memref_squeeze %390 : memref<1x!tpu.dma_semaphore, #tpu.memory_space<semaphore_mem>> -> memref<!tpu.dma_semaphore, #tpu.memory_space<semaphore_mem>>
    tpu.enqueue_dma source(%388 : memref<1x128xf32, #tpu.memory_space<vmem>>) target(%389 : memref<1x128xf32, #tpu.memory_space<any>>) target_semaphore(%391 : memref<!tpu.dma_semaphore, #tpu.memory_space<semaphore_mem>>)
    %c5_120 = arith.constant 5 : index
    %392 = memref.load %arg2[%c5_120] : memref<8xi32, #tpu.memory_space<smem>>
    %c5_i32_121 = arith.constant 5 : i32
    %c0_i32_122 = arith.constant 0 : i32
    %393 = tpu.memref_slice %arg6[%392, %c0_i32_122] : memref<128x128xf32, #tpu.memory_space<vmem>> -> memref<1x128xf32, #tpu.memory_space<vmem>>
    %c0_i32_123 = arith.constant 0 : i32
    %394 = tpu.memref_slice %arg5[%392, %c0_i32_123] : memref<128x128xf32, #tpu.memory_space<any>> -> memref<1x128xf32, #tpu.memory_space<any>>
    %395 = tpu.memref_slice %arg7[%c5_i32_121] : memref<9x!tpu.dma_semaphore, #tpu.memory_space<semaphore_mem>> -> memref<1x!tpu.dma_semaphore, #tpu.memory_space<semaphore_mem>>
    %396 = tpu.memref_squeeze %395 : memref<1x!tpu.dma_semaphore, #tpu.memory_space<semaphore_mem>> -> memref<!tpu.dma_semaphore, #tpu.memory_space<semaphore_mem>>
    tpu.enqueue_dma source(%393 : memref<1x128xf32, #tpu.memory_space<vmem>>) target(%394 : memref<1x128xf32, #tpu.memory_space<any>>) target_semaphore(%396 : memref<!tpu.dma_semaphore, #tpu.memory_space<semaphore_mem>>)
    %c6_124 = arith.constant 6 : index
    %397 = memref.load %arg2[%c6_124] : memref<8xi32, #tpu.memory_space<smem>>
    %c6_i32_125 = arith.constant 6 : i32
    %c0_i32_126 = arith.constant 0 : i32
    %398 = tpu.memref_slice %arg6[%397, %c0_i32_126] : memref<128x128xf32, #tpu.memory_space<vmem>> -> memref<1x128xf32, #tpu.memory_space<vmem>>
    %c0_i32_127 = arith.constant 0 : i32
    %399 = tpu.memref_slice %arg5[%397, %c0_i32_127] : memref<128x128xf32, #tpu.memory_space<any>> -> memref<1x128xf32, #tpu.memory_space<any>>
    %400 = tpu.memref_slice %arg7[%c6_i32_125] : memref<9x!tpu.dma_semaphore, #tpu.memory_space<semaphore_mem>> -> memref<1x!tpu.dma_semaphore, #tpu.memory_space<semaphore_mem>>
    %401 = tpu.memref_squeeze %400 : memref<1x!tpu.dma_semaphore, #tpu.memory_space<semaphore_mem>> -> memref<!tpu.dma_semaphore, #tpu.memory_space<semaphore_mem>>
    tpu.enqueue_dma source(%398 : memref<1x128xf32, #tpu.memory_space<vmem>>) target(%399 : memref<1x128xf32, #tpu.memory_space<any>>) target_semaphore(%401 : memref<!tpu.dma_semaphore, #tpu.memory_space<semaphore_mem>>)
    %c7_128 = arith.constant 7 : index
    %402 = memref.load %arg2[%c7_128] : memref<8xi32, #tpu.memory_space<smem>>
    %c7_i32_129 = arith.constant 7 : i32
    %c0_i32_130 = arith.constant 0 : i32
    %403 = tpu.memref_slice %arg6[%402, %c0_i32_130] : memref<128x128xf32, #tpu.memory_space<vmem>> -> memref<1x128xf32, #tpu.memory_space<vmem>>
    %c0_i32_131 = arith.constant 0 : i32
    %404 = tpu.memref_slice %arg5[%402, %c0_i32_131] : memref<128x128xf32, #tpu.memory_space<any>> -> memref<1x128xf32, #tpu.memory_space<any>>
    %405 = tpu.memref_slice %arg7[%c7_i32_129] : memref<9x!tpu.dma_semaphore, #tpu.memory_space<semaphore_mem>> -> memref<1x!tpu.dma_semaphore, #tpu.memory_space<semaphore_mem>>
    %406 = tpu.memref_squeeze %405 : memref<1x!tpu.dma_semaphore, #tpu.memory_space<semaphore_mem>> -> memref<!tpu.dma_semaphore, #tpu.memory_space<semaphore_mem>>
    tpu.enqueue_dma source(%403 : memref<1x128xf32, #tpu.memory_space<vmem>>) target(%404 : memref<1x128xf32, #tpu.memory_space<any>>) target_semaphore(%406 : memref<!tpu.dma_semaphore, #tpu.memory_space<semaphore_mem>>)
    %c0_132 = arith.constant 0 : index
    %407 = memref.load %arg2[%c0_132] : memref<8xi32, #tpu.memory_space<smem>>
    %c0_i32_133 = arith.constant 0 : i32
    %c0_i32_134 = arith.constant 0 : i32
    %408 = tpu.memref_slice %arg6[%407, %c0_i32_134] : memref<128x128xf32, #tpu.memory_space<vmem>> -> memref<1x128xf32, #tpu.memory_space<vmem>>
    %c0_i32_135 = arith.constant 0 : i32
    %409 = tpu.memref_slice %arg5[%407, %c0_i32_135] : memref<128x128xf32, #tpu.memory_space<any>> -> memref<1x128xf32, #tpu.memory_space<any>>
    %410 = tpu.memref_slice %arg7[%c0_i32_133] : memref<9x!tpu.dma_semaphore, #tpu.memory_space<semaphore_mem>> -> memref<1x!tpu.dma_semaphore, #tpu.memory_space<semaphore_mem>>
    %411 = tpu.memref_squeeze %410 : memref<1x!tpu.dma_semaphore, #tpu.memory_space<semaphore_mem>> -> memref<!tpu.dma_semaphore, #tpu.memory_space<semaphore_mem>>
    tpu.wait_dma2 semaphore(%411 : memref<!tpu.dma_semaphore, #tpu.memory_space<semaphore_mem>>) src(%408 : memref<1x128xf32, #tpu.memory_space<vmem>>) dst(%409 : memref<1x128xf32, #tpu.memory_space<any>>)
    %c1_136 = arith.constant 1 : index
    %412 = memref.load %arg2[%c1_136] : memref<8xi32, #tpu.memory_space<smem>>
    %c1_i32_137 = arith.constant 1 : i32
    %c0_i32_138 = arith.constant 0 : i32
    %413 = tpu.memref_slice %arg6[%412, %c0_i32_138] : memref<128x128xf32, #tpu.memory_space<vmem>> -> memref<1x128xf32, #tpu.memory_space<vmem>>
    %c0_i32_139 = arith.constant 0 : i32
    %414 = tpu.memref_slice %arg5[%412, %c0_i32_139] : memref<128x128xf32, #tpu.memory_space<any>> -> memref<1x128xf32, #tpu.memory_space<any>>
    %415 = tpu.memref_slice %arg7[%c1_i32_137] : memref<9x!tpu.dma_semaphore, #tpu.memory_space<semaphore_mem>> -> memref<1x!tpu.dma_semaphore, #tpu.memory_space<semaphore_mem>>
    %416 = tpu.memref_squeeze %415 : memref<1x!tpu.dma_semaphore, #tpu.memory_space<semaphore_mem>> -> memref<!tpu.dma_semaphore, #tpu.memory_space<semaphore_mem>>
    tpu.wait_dma2 semaphore(%416 : memref<!tpu.dma_semaphore, #tpu.memory_space<semaphore_mem>>) src(%413 : memref<1x128xf32, #tpu.memory_space<vmem>>) dst(%414 : memref<1x128xf32, #tpu.memory_space<any>>)
    %c2_140 = arith.constant 2 : index
    %417 = memref.load %arg2[%c2_140] : memref<8xi32, #tpu.memory_space<smem>>
    %c2_i32_141 = arith.constant 2 : i32
    %c0_i32_142 = arith.constant 0 : i32
    %418 = tpu.memref_slice %arg6[%417, %c0_i32_142] : memref<128x128xf32, #tpu.memory_space<vmem>> -> memref<1x128xf32, #tpu.memory_space<vmem>>
    %c0_i32_143 = arith.constant 0 : i32
    %419 = tpu.memref_slice %arg5[%417, %c0_i32_143] : memref<128x128xf32, #tpu.memory_space<any>> -> memref<1x128xf32, #tpu.memory_space<any>>
    %420 = tpu.memref_slice %arg7[%c2_i32_141] : memref<9x!tpu.dma_semaphore, #tpu.memory_space<semaphore_mem>> -> memref<1x!tpu.dma_semaphore, #tpu.memory_space<semaphore_mem>>
    %421 = tpu.memref_squeeze %420 : memref<1x!tpu.dma_semaphore, #tpu.memory_space<semaphore_mem>> -> memref<!tpu.dma_semaphore, #tpu.memory_space<semaphore_mem>>
    tpu.wait_dma2 semaphore(%421 : memref<!tpu.dma_semaphore, #tpu.memory_space<semaphore_mem>>) src(%418 : memref<1x128xf32, #tpu.memory_space<vmem>>) dst(%419 : memref<1x128xf32, #tpu.memory_space<any>>)
    %c3_144 = arith.constant 3 : index
    %422 = memref.load %arg2[%c3_144] : memref<8xi32, #tpu.memory_space<smem>>
    %c3_i32_145 = arith.constant 3 : i32
    %c0_i32_146 = arith.constant 0 : i32
    %423 = tpu.memref_slice %arg6[%422, %c0_i32_146] : memref<128x128xf32, #tpu.memory_space<vmem>> -> memref<1x128xf32, #tpu.memory_space<vmem>>
    %c0_i32_147 = arith.constant 0 : i32
    %424 = tpu.memref_slice %arg5[%422, %c0_i32_147] : memref<128x128xf32, #tpu.memory_space<any>> -> memref<1x128xf32, #tpu.memory_space<any>>
    %425 = tpu.memref_slice %arg7[%c3_i32_145] : memref<9x!tpu.dma_semaphore, #tpu.memory_space<semaphore_mem>> -> memref<1x!tpu.dma_semaphore, #tpu.memory_space<semaphore_mem>>
    %426 = tpu.memref_squeeze %425 : memref<1x!tpu.dma_semaphore, #tpu.memory_space<semaphore_mem>> -> memref<!tpu.dma_semaphore, #tpu.memory_space<semaphore_mem>>
    tpu.wait_dma2 semaphore(%426 : memref<!tpu.dma_semaphore, #tpu.memory_space<semaphore_mem>>) src(%423 : memref<1x128xf32, #tpu.memory_space<vmem>>) dst(%424 : memref<1x128xf32, #tpu.memory_space<any>>)
    %c4_148 = arith.constant 4 : index
    %427 = memref.load %arg2[%c4_148] : memref<8xi32, #tpu.memory_space<smem>>
    %c4_i32_149 = arith.constant 4 : i32
    %c0_i32_150 = arith.constant 0 : i32
    %428 = tpu.memref_slice %arg6[%427, %c0_i32_150] : memref<128x128xf32, #tpu.memory_space<vmem>> -> memref<1x128xf32, #tpu.memory_space<vmem>>
    %c0_i32_151 = arith.constant 0 : i32
    %429 = tpu.memref_slice %arg5[%427, %c0_i32_151] : memref<128x128xf32, #tpu.memory_space<any>> -> memref<1x128xf32, #tpu.memory_space<any>>
    %430 = tpu.memref_slice %arg7[%c4_i32_149] : memref<9x!tpu.dma_semaphore, #tpu.memory_space<semaphore_mem>> -> memref<1x!tpu.dma_semaphore, #tpu.memory_space<semaphore_mem>>
    %431 = tpu.memref_squeeze %430 : memref<1x!tpu.dma_semaphore, #tpu.memory_space<semaphore_mem>> -> memref<!tpu.dma_semaphore, #tpu.memory_space<semaphore_mem>>
    tpu.wait_dma2 semaphore(%431 : memref<!tpu.dma_semaphore, #tpu.memory_space<semaphore_mem>>) src(%428 : memref<1x128xf32, #tpu.memory_space<vmem>>) dst(%429 : memref<1x128xf32, #tpu.memory_space<any>>)
    %c5_152 = arith.constant 5 : index
    %432 = memref.load %arg2[%c5_152] : memref<8xi32, #tpu.memory_space<smem>>
    %c5_i32_153 = arith.constant 5 : i32
    %c0_i32_154 = arith.constant 0 : i32
    %433 = tpu.memref_slice %arg6[%432, %c0_i32_154] : memref<128x128xf32, #tpu.memory_space<vmem>> -> memref<1x128xf32, #tpu.memory_space<vmem>>
    %c0_i32_155 = arith.constant 0 : i32
    %434 = tpu.memref_slice %arg5[%432, %c0_i32_155] : memref<128x128xf32, #tpu.memory_space<any>> -> memref<1x128xf32, #tpu.memory_space<any>>
    %435 = tpu.memref_slice %arg7[%c5_i32_153] : memref<9x!tpu.dma_semaphore, #tpu.memory_space<semaphore_mem>> -> memref<1x!tpu.dma_semaphore, #tpu.memory_space<semaphore_mem>>
    %436 = tpu.memref_squeeze %435 : memref<1x!tpu.dma_semaphore, #tpu.memory_space<semaphore_mem>> -> memref<!tpu.dma_semaphore, #tpu.memory_space<semaphore_mem>>
    tpu.wait_dma2 semaphore(%436 : memref<!tpu.dma_semaphore, #tpu.memory_space<semaphore_mem>>) src(%433 : memref<1x128xf32, #tpu.memory_space<vmem>>) dst(%434 : memref<1x128xf32, #tpu.memory_space<any>>)
    %c6_156 = arith.constant 6 : index
    %437 = memref.load %arg2[%c6_156] : memref<8xi32, #tpu.memory_space<smem>>
    %c6_i32_157 = arith.constant 6 : i32
    %c0_i32_158 = arith.constant 0 : i32
    %438 = tpu.memref_slice %arg6[%437, %c0_i32_158] : memref<128x128xf32, #tpu.memory_space<vmem>> -> memref<1x128xf32, #tpu.memory_space<vmem>>
    %c0_i32_159 = arith.constant 0 : i32
    %439 = tpu.memref_slice %arg5[%437, %c0_i32_159] : memref<128x128xf32, #tpu.memory_space<any>> -> memref<1x128xf32, #tpu.memory_space<any>>
    %440 = tpu.memref_slice %arg7[%c6_i32_157] : memref<9x!tpu.dma_semaphore, #tpu.memory_space<semaphore_mem>> -> memref<1x!tpu.dma_semaphore, #tpu.memory_space<semaphore_mem>>
    %441 = tpu.memref_squeeze %440 : memref<1x!tpu.dma_semaphore, #tpu.memory_space<semaphore_mem>> -> memref<!tpu.dma_semaphore, #tpu.memory_space<semaphore_mem>>
    tpu.wait_dma2 semaphore(%441 : memref<!tpu.dma_semaphore, #tpu.memory_space<semaphore_mem>>) src(%438 : memref<1x128xf32, #tpu.memory_space<vmem>>) dst(%439 : memref<1x128xf32, #tpu.memory_space<any>>)
    %c7_160 = arith.constant 7 : index
    %442 = memref.load %arg2[%c7_160] : memref<8xi32, #tpu.memory_space<smem>>
    %c7_i32_161 = arith.constant 7 : i32
    %c0_i32_162 = arith.constant 0 : i32
    %443 = tpu.memref_slice %arg6[%442, %c0_i32_162] : memref<128x128xf32, #tpu.memory_space<vmem>> -> memref<1x128xf32, #tpu.memory_space<vmem>>
    %c0_i32_163 = arith.constant 0 : i32
    %444 = tpu.memref_slice %arg5[%442, %c0_i32_163] : memref<128x128xf32, #tpu.memory_space<any>> -> memref<1x128xf32, #tpu.memory_space<any>>
    %445 = tpu.memref_slice %arg7[%c7_i32_161] : memref<9x!tpu.dma_semaphore, #tpu.memory_space<semaphore_mem>> -> memref<1x!tpu.dma_semaphore, #tpu.memory_space<semaphore_mem>>
    %446 = tpu.memref_squeeze %445 : memref<1x!tpu.dma_semaphore, #tpu.memory_space<semaphore_mem>> -> memref<!tpu.dma_semaphore, #tpu.memory_space<semaphore_mem>>
    tpu.wait_dma2 semaphore(%446 : memref<!tpu.dma_semaphore, #tpu.memory_space<semaphore_mem>>) src(%443 : memref<1x128xf32, #tpu.memory_space<vmem>>) dst(%444 : memref<1x128xf32, #tpu.memory_space<any>>)
    return
  }
}

</mosaic_0001>

<bundles_post_ra>
// kernel: invnet_forward.1
= control target key start
LH: loop header
LB: loop body
LE: loop exit
PB: predicated region body
PF: predicated region fallthrough
CT: control target
= control target key end

     0   :  { %12 = vsyncpa [#allocation7], 0  ;;  %s1482_s0 = inlined_call_operand.vmem [shape: f32[8,128], index: 0, kind: input, shape index: {}]   ;;  %s1483_s1 = inlined_call_operand.vmem [shape: f32[128,128], index: 1, kind: input, shape index: {}, may-alias: {1,5}]   ;;  %s1484_s2 = inlined_call_operand.vmem [shape: s32[8], index: 2, kind: input, shape index: {}]   ;;  %s1485_s3 = inlined_call_operand.<no memory space> [shape: f32[1], index: 3, kind: input, shape index: {}]   ;;  %s1486_s4 = inlined_call_operand.hbm [shape: f32[1,1], index: 4, kind: output, shape index: {0}]   ;;  %s1487_s5 = inlined_call_operand.vmem [shape: f32[128,128], index: 5, kind: output, shape index: {1}, may-alias: {1,5}]  }
   0x1   :  { %13 = vsyncpa [#allocation6], 0  ;;  %s21_s20 = sshll.u32 %s1484_s2, 4  ;;  %s1173_s21 = smov [#allocation5]   ;;  %s22_s20 = int_to_ptr.vmem [resolvable:$true] %s21_s20 }
   0x2   :  { %24 = dma.vmem_to_smem %s22_s20, 16, %s1173_s21, [#allocation7]  }
   0x3   :  { %1151 = dma.done.wait [#allocation7], 16  }
   0x4   :  { %1152 = vsyncadd [#allocation7], 4294967280 }
   0x5   :  { %31 = sfence }
   0x6   :  { %v43_v0 = vld [vmem:[%s1483_s1] sm:$0xff]  ;;  %v45_v1 = vld [vmem:[%s1483_s1 + $0x8] sm:$0xff]  ;;  %v47_v2 = vld [vmem:[%s1483_s1 + $0x10] sm:$0xff] }
   0x7   :  { %44 = vst [vmem:[#allocation2] sm:$0xff] %v43_v0  ;;  %v49_v3 = vld [vmem:[%s1483_s1 + $0x18] sm:$0xff]  ;;  %v51_v4 = vld [vmem:[%s1483_s1 + $0x20] sm:$0xff]  ;;  %v53_v5 = vld [vmem:[%s1483_s1 + $0x28] sm:$0xff] }
   0x8   :  { %46 = vst [vmem:[#allocation2 + $0x8] sm:$0xff] %v45_v1  ;;  %v55_v6 = vld [vmem:[%s1483_s1 + $0x30] sm:$0xff]  ;;  %v57_v7 = vld [vmem:[%s1483_s1 + $0x38] sm:$0xff]  ;;  %v59_v8 = vld [vmem:[%s1483_s1 + $0x40] sm:$0xff] }
   0x9   :  { %48 = vst [vmem:[#allocation2 + $0x10] sm:$0xff] %v47_v2  ;;  %v61_v9 = vld [vmem:[%s1483_s1 + $0x48] sm:$0xff]  ;;  %v63_v10 = vld [vmem:[%s1483_s1 + $0x50] sm:$0xff]  ;;  %v65_v11 = vld [vmem:[%s1483_s1 + $0x58] sm:$0xff] }
   0xa   :  { %50 = vst [vmem:[#allocation2 + $0x18] sm:$0xff] %v49_v3  ;;  %v67_v12 = vld [vmem:[%s1483_s1 + $0x60] sm:$0xff]  ;;  %v69_v13 = vld [vmem:[%s1483_s1 + $0x68] sm:$0xff]  ;;  %v71_v14 = vld [vmem:[%s1483_s1 + $0x70] sm:$0xff] }
   0xb   :  { %52 = vst [vmem:[#allocation2 + $0x20] sm:$0xff] %v51_v4  ;;  %v73_v15 = vld [vmem:[%s1483_s1 + $0x78] sm:$0xff] }
   0xc   :  { %54 = vst [vmem:[#allocation2 + $0x28] sm:$0xff] %v53_v5 }
   0xd   :  { %56 = vst [vmem:[#allocation2 + $0x30] sm:$0xff] %v55_v6 }
   0xe   :  { %58 = vst [vmem:[#allocation2 + $0x38] sm:$0xff] %v57_v7 }
   0xf   :  { %60 = vst [vmem:[#allocation2 + $0x40] sm:$0xff] %v59_v8 }
  0x10   :  { %62 = vst [vmem:[#allocation2 + $0x48] sm:$0xff] %v61_v9 }
  0x11   :  { %64 = vst [vmem:[#allocation2 + $0x50] sm:$0xff] %v63_v10 }
  0x12   :  { %66 = vst [vmem:[#allocation2 + $0x58] sm:$0xff] %v65_v11 }
  0x13   :  { %68 = vst [vmem:[#allocation2 + $0x60] sm:$0xff] %v67_v12 }
  0x14   :  { %70 = vst [vmem:[#allocation2 + $0x68] sm:$0xff] %v69_v13 }
  0x15   :  { %72 = vst [vmem:[#allocation2 + $0x70] sm:$0xff] %v71_v14 }
  0x16   :  { %74 = vst [vmem:[#allocation2 + $0x78] sm:$0xff] %v73_v15 }
  0x17   :  { %80 = vsyncadd [#allocation3 + $0x8], 2048  ;;  %v81_v16 = vld [vmem:[%s1482_s0] sm:$0xff]  ;;  %v84_v17 = vlaneseq  ;;  %s87_s29 = sld [smem:[#allocation5]] }
  0x18   :  { %v1260_v18 = vmul.f32 20.0, %v81_v16  ;;  %s1046_s30 = sld [smem:[#allocation5 + $0x1]] }
  0x19   :  { %v85_v19 = vshrl.u32 %v84_v17, 7  ;;  %s1047_s6 = sld [smem:[#allocation5 + $0x2]]  ;;  %v1264_v32 = vand.u32 127, %v84_v17 }
  0x1a   :  { %v83_v20 = vpack.c.bf16 %v1260_v18, %v1260_v18  ;;  %s1048_s7 = sld [smem:[#allocation5 + $0x3]] }
  0x1b   :  { %vm86_vm0 = vcmp.eq.s32.totalorder %v85_v19, 0  ;;  %s1049_s1 = sld [smem:[#allocation5 + $0x4]]  ;;  %vm90_vm1 = vcmp.eq.s32.totalorder %v85_v19, 1  ;;  %vm94_vm2 = vcmp.eq.s32.totalorder %v85_v19, 2  ;;  %vm98_vm3 = vcmp.eq.s32.totalorder %v85_v19, 3 }
  0x1c   :  { %s1050_s8 = sld [smem:[#allocation5 + $0x5]]  ;;  %vm102_vm4 = vcmp.eq.s32.totalorder %v85_v19, 4  ;;  %vm106_vm5 = vcmp.eq.s32.totalorder %v85_v19, 5  ;;  %vm110_vm6 = vcmp.eq.s32.totalorder %v85_v19, 6  ;;  %vm114_vm7 = vcmp.eq.s32.totalorder %v85_v19, 7 }
  0x1d   :  { %v88_v21 = vstv %s87_s29  ;;  %s1051_s9 = sld [smem:[#allocation5 + $0x6]] }
  0x1e   :  { %v89_v22 = vsel %vm86_vm0, %v88_v21, 0  ;;  %v92_v23 = vstv %s1046_s30  ;;  %s1052_s10 = sld [smem:[#allocation5 + $0x7]] }
  0x1f   :  { %v93_v24 = vsel %vm90_vm1, %v92_v23, %v89_v22  ;;  %v96_v25 = vstv %s1047_s6 }
  0x20   :  { %v97_v26 = vsel %vm94_vm2, %v96_v25, %v93_v24  ;;  %v100_v27 = vstv %s1048_s7 }
  0x21   :  { %v101_v28 = vsel %vm98_vm3, %v100_v27, %v97_v26  ;;  %v104_v29 = vstv %s1049_s1 }
  0x22   :  { %v105_v30 = vsel %vm102_vm4, %v104_v29, %v101_v28  ;;  %v108_v31 = vstv %s1050_s8 }
  0x23   :  { %v109_v33 = vsel %vm106_vm5, %v108_v31, %v105_v30  ;;  %v112_v34 = vstv %s1051_s9 }
  0x24   :  { %v113_v35 = vsel %vm110_vm6, %v112_v34, %v109_v33  ;;  %v116_v36 = vstv %s1052_s10 }
  0x25   :  { %v1266_v37 = vsel %vm114_vm7, %v116_v36, %v113_v35 }
  0x26   :  { %vm120_vm8 = vcmp.eq.s32.totalorder %v1264_v32, %v1266_v37 }
  0x27   :  { %1153 = dma.done.wait [#allocation3 + $0x8], 2048 }
  0x28   :  { %1154 = vsyncadd [#allocation3 + $0x8], 4294965248  ;;  %s333_s13 = ssub.f32 1.0, %s1485_s3  ;;  %v1280_v39 = vstv %s1485_s3  ;;  %v138_v40 = vld [vmem:[#allocation2 + $0x70] sm:$0xff]  ;;  %v139_v41 = vld [vmem:[#allocation2 + $0x78] sm:$0xff]  ;;  %vm338_vm9 = vcmask 1040384  }
  0x29   :  { %s1273_s14 = sld [smem:[#allocation5]]  ;;  %v328_v42 = vld [vmem:[%s1482_s0] sm:$0x1]  ;;  %v147_v43 = vpack.c.bf16 %v139_v41, %v138_v40  ;;  %v137_v49 = vld [vmem:[#allocation2 + $0x68] sm:$0xff]  ;;  %v134_v53 = vld [vmem:[#allocation2 + $0x50] sm:$0xff] }
  0x2a   :  { %v1275_v38 = vstv %s333_s13  ;;  %v136_v48 = vld [vmem:[#allocation2 + $0x60] sm:$0xff]  ;;  %v135_v54 = vld [vmem:[#allocation2 + $0x58] sm:$0xff]  ;;  %v133_v57 = vld [vmem:[#allocation2 + $0x48] sm:$0xff]  ;;  %s1298_s20 = sld [smem:[#allocation5 + $0x1]] }
  0x2b   :  { %v335_v45 = vmul.f32 %v1275_v38, %v328_v42  ;;  %148 = vmatpush.bf16.xpose.msra.mxu0 %v147_v43  ;;  %v146_v51 = vpack.c.bf16 %v137_v49, %v136_v48  ;;  %v145_v55 = vpack.c.bf16 %v135_v54, %v134_v53  ;;  %v132_v56 = vld [vmem:[#allocation2 + $0x40] sm:$0xff]  ;;  %v130_v59 = vld [vmem:[#allocation2 + $0x30] sm:$0xff]  ;;  %v131_v60 = vld [vmem:[#allocation2 + $0x38] sm:$0xff]  ;;  %s1315_s25 = sld [smem:[#allocation5 + $0x2]] }
  0x2c   :  { %v144_v58 = vpack.c.bf16 %v133_v57, %v132_v56  ;;  %v143_v61 = vpack.c.bf16 %v131_v60, %v130_v59  ;;  %v128_v62 = vld [vmem:[#allocation2 + $0x20] sm:$0xff]  ;;  %v129_v63 = vld [vmem:[#allocation2 + $0x28] sm:$0xff]  ;;  %v126_v1 = vld [vmem:[#allocation2 + $0x10] sm:$0xff]  ;;  %s1336_s29 = sld [smem:[#allocation5 + $0x3]] }
  0x2d   :  { %v142_v0 = vpack.c.bf16 %v129_v63, %v128_v62  ;;  %v127_v2 = vld [vmem:[#allocation2 + $0x18] sm:$0xff]  ;;  %v124_v4 = vld [vmem:[#allocation2] sm:$0xff]  ;;  %v125_v5 = vld [vmem:[#allocation2 + $0x8] sm:$0xff]  ;;  %s1354_s8 = sld [smem:[#allocation5 + $0x4]] }
  0x2e   :  { %v141_v3 = vpack.c.bf16 %v127_v2, %v126_v1  ;;  %v140_v6 = vpack.c.bf16 %v125_v5, %v124_v4  ;;  %v363_v25 = vld [vmem:[%s1482_s0 + $0x1] sm:$0x1]  ;;  %v394_v57 = vld [vmem:[%s1482_s0 + $0x2] sm:$0x1]  ;;  %s1382_s13 = sld [smem:[#allocation5 + $0x5]] }
  0x2f   :  { %s1286_s19 = scalar_lea.vmem [#allocation2], %s1273_s14  ;;  %v367_v26 = vmul.f32 %v363_v25, %v1275_v38 }
  0x30   :  { %v330_v44 = vld [vmem:[%s1286_s19] sm:$0x1]  ;;  %s364_s23 = scalar_lea.vmem [#allocation2], %s1298_s20 }
  0x31   :  { %v332_v46 = vmul.f32 %v1280_v39, %v330_v44  ;;  %s395_s2 = scalar_lea.vmem [#allocation2], %s1315_s25 }
  0x32   :  { %s426_s7 = scalar_lea.vmem [#allocation2], %s1336_s29  ;;  %s581_s29 = scalar_lea.vmem %s1487_s5, %s1273_s14 }
  0x33   :  { %v336_v47 = vadd.f32 %v335_v45, %v332_v46  ;;  %149 = vmatpush.bf16.xpose.msra.mxu0 %v146_v51  ;;  %s457_s11 = scalar_lea.vmem [#allocation2], %s1354_s8 }
  0x34   :  { %s488_s17 = scalar_lea.vmem [#allocation2], %s1382_s13 }
  0x35   :  { %v337_v50 = vmul.f32 %v336_v47, %v336_v47 }
  0x37   :  { %v339_v52 = vsel %vm338_vm9, %v337_v50, 0.0 }
  0x38   :  { %340 = vadd.xlane.f32.xlu0 %v339_v52 }
  0x3b   :  { %150 = vmatpush.bf16.xpose.msra.mxu0 %v145_v55 }
  0x43   :  { %151 = vmatpush.bf16.xpose.msra.mxu0 %v144_v58  ;;  %v398_v58 = vmul.f32 %v394_v57, %v1275_v38 }
  0x4b   :  { %152 = vmatpush.bf16.xpose.msra.mxu0 %v143_v61 }
  0x53   :  { %153 = vmatpush.bf16.xpose.msra.mxu0 %v142_v0 }
  0x5b   :  { %154 = vmatpush.bf16.xpose.msra.mxu0 %v141_v3 }
  0x63   :  { %155 = vmatpush.bf16.xpose.msra.mxu0 %v140_v6 }
  0x6a   :  { %156 = vmatmul.bf16.vlgmr.msra.gmra.mxu0 %v83_v20 }
  0xab   :  { %v341_v7 = vpop.xlane.xlu0 %340 }
  0xac   :  { %v342_v8 = vrot.slane %v341_v7, 4 }
  0xae   :  { %v343_v9 = vadd.f32 %v342_v8, %v341_v7 }
  0xb0   :  { %v344_v10 = vrot.slane %v343_v9, 2 }
  0xb2   :  { %v345_v11 = vadd.f32 %v344_v10, %v343_v9 }
  0xb4   :  { %v346_v12 = vrot.slane %v345_v11, 1 }
  0xb6   :  { %v347_v13 = vadd.f32 %v346_v12, %v345_v11 }
  0xb8   :  { %1076 = vpush %v347_v13 }
  0xe7   :  { %v1295_v15 = vpop.f32.mrf.mxu0 }
  0xe8   :  { %161 = vmax.xlane.f32.xlu1 %v1295_v15 }
  0xe9   :  { %s1077_s3 = spop %1076 }
  0xea   :  { %v349_v14 = vstv %s1077_s3  ;;  %s1401_s3 = sld [smem:[#allocation5 + $0x6]] }
  0xeb   :  { %1095 = vrsqrt.f32 %v349_v14  ;;  %vm356_vm10 = vweird.f32 %v349_v14 }
  0xef   :  { %v159_v20 = vpop.f32.mrf.mxu0 }
  0xf0   :  { %s519_s22 = scalar_lea.vmem [#allocation2], %s1401_s3 }
  0xf1   :  { %v1096_v16 = vpop.eup %1095 }
  0xf2   :  { %v351_v17 = vmul.f32 %v1096_v16, %v349_v14  ;;  %vm357_vm11 = vweird.f32 %v1096_v16 }
  0xf3   :  { %vm358_vm12 = vmor %vm356_vm10, %vm357_vm11 }
  0xf4   :  { %v352_v18 = vmul.f32 %v1096_v16, %v351_v17 }
  0xf6   :  { %v353_v19 = vmul.f32 0.5, %v352_v18 }
  0xf8   :  { %v354_v21 = vsub.f32 1.5, %v353_v19 }
  0xfa   :  { %v355_v22 = vmul.f32 %v1096_v16, %v354_v21 }
  0xfc   :  { %v359_v23 = vsel %vm358_vm12, %v1096_v16, %v355_v22 }
  0xfd   :  { %v360_v24 = vmul.f32 %v359_v23, %v336_v47 }
  0xff   :  { %361 = vst [vmem:[%s1286_s19] sm:$0x1] %v360_v24 }
 0x106   :  { %v365_v27 = vld [vmem:[%s364_s23] sm:$0x1] }
 0x107   :  { %v366_v28 = vmul.f32 %v365_v27, %v1280_v39 }
 0x109   :  { %v368_v29 = vadd.f32 %v367_v26, %v366_v28  ;;  %v425_v26 = vld [vmem:[%s1482_s0 + $0x3] sm:$0x1] }
 0x10a   :  { %v429_v27 = vmul.f32 %v425_v26, %v1275_v38 }
 0x10b   :  { %v369_v30 = vmul.f32 %v368_v29, %v368_v29 }
 0x10d   :  { %v370_v31 = vsel %vm338_vm9, %v369_v30, 0.0 }
 0x10e   :  { %371 = vadd.xlane.f32.xlu0 %v370_v31 }
 0x15b   :  { %v1310_v33 = vpop.xlane.xlu1 %161 }
 0x15c   :  { %vm174_vm13 = vcmp.eq.f32.partialorder %v1295_v15, %v1310_v33 }
 0x15d   :  { %v175_v34 = vsel %vm174_vm13, %v1264_v32, 128 }
 0x15e   :  { %v177_v35 = vshra.s32 %v175_v34, 16  ;;  %v176_v56 = vand.u32 65535, %v175_v34 }
 0x160   :  { %v179_v36 = vcvt.s32.f32 %v177_v35  ;;  %v178_v60 = vcvt.s32.f32 %v176_v56 }
 0x162   :  { %180 = vmin.xlane.f32.xlu2 %v179_v36 }
 0x181   :  { %v372_v40 = vpop.xlane.xlu0 %371 }
 0x182   :  { %v373_v41 = vrot.slane %v372_v40, 4 }
 0x184   :  { %v374_v42 = vadd.f32 %v373_v41, %v372_v40 }
 0x186   :  { %v375_v43 = vrot.slane %v374_v42, 2 }
 0x188   :  { %v376_v44 = vadd.f32 %v375_v43, %v374_v42 }
 0x18a   :  { %v377_v45 = vrot.slane %v376_v44, 1 }
 0x18c   :  { %v378_v46 = vadd.f32 %v377_v45, %v376_v44 }
 0x18e   :  { %1078 = vpush %v378_v46 }
 0x1bf   :  { %s1079_s24 = spop %1078 }
 0x1c0   :  { %v380_v47 = vstv %s1079_s24  ;;  %s1420_s24 = sld [smem:[#allocation5 + $0x7]] }
 0x1c1   :  { %1097 = vrsqrt.f32 %v380_v47  ;;  %vm387_vm14 = vweird.f32 %v380_v47 }
 0x1c6   :  { %s550_s27 = scalar_lea.vmem [#allocation2], %s1420_s24 }
 0x1c7   :  { %v1098_v48 = vpop.eup %1097 }
 0x1c8   :  { %v382_v49 = vmul.f32 %v1098_v48, %v380_v47  ;;  %vm388_vm15 = vweird.f32 %v1098_v48 }
 0x1c9   :  { %vm389_vm0 = vmor %vm387_vm14, %vm388_vm15 }
 0x1ca   :  { %v383_v50 = vmul.f32 %v1098_v48, %v382_v49 }
 0x1cc   :  { %v384_v51 = vmul.f32 0.5, %v383_v50 }
 0x1ce   :  { %v385_v52 = vsub.f32 1.5, %v384_v51 }
 0x1d0   :  { %v386_v53 = vmul.f32 %v1098_v48, %v385_v52 }
 0x1d2   :  { %v390_v54 = vsel %vm389_vm0, %v1098_v48, %v386_v53 }
 0x1d3   :  { %v391_v55 = vmul.f32 %v390_v54, %v368_v29 }
 0x1d5   :  { %392 = vst [vmem:[%s364_s23] sm:$0x1] %v391_v55  ;;  %v181_v59 = vpop.xlane.xlu2 %180 }
 0x1d6   :  { %vm182_vm1 = vcmp.eq.f32.partialorder %v179_v36, %v181_v59  ;;  %v187_v3 = vcvt.f32.s32 %v181_v59 }
 0x1d7   :  { %v183_v63 = vsel %vm182_vm1, %v178_v60, inf }
 0x1d8   :  { %184 = vmin.xlane.f32.xlu2 %v183_v63  ;;  %v188_v5 = vshll.u32 %v187_v3, 16 }
 0x1dc   :  { %v396_v61 = vld [vmem:[%s395_s2] sm:$0x1] }
 0x1dd   :  { %v397_v62 = vmul.f32 %v396_v61, %v1280_v39 }
 0x1df   :  { %v399_v0 = vadd.f32 %v398_v58, %v397_v62  ;;  %v456_v62 = vld [vmem:[%s1482_s0 + $0x4] sm:$0x1] }
 0x1e0   :  { %v460_v63 = vmul.f32 %v456_v62, %v1275_v38 }
 0x1e1   :  { %v400_v1 = vmul.f32 %v399_v0, %v399_v0 }
 0x1e3   :  { %v401_v2 = vsel %vm338_vm9, %v400_v1, 0.0 }
 0x1e4   :  { %402 = vadd.xlane.f32.xlu1 %v401_v2 }
 0x24b   :  { %v185_v4 = vpop.xlane.xlu2 %184 }
 0x24c   :  { %v186_v6 = vcvt.f32.s32 %v185_v4 }
 0x24e   :  { %v1328_v7 = vadd.s32 %v188_v5, %v186_v6 }
 0x250   :  { %vm193_vm2 = vcmp.eq.s32.totalorder %v1264_v32, %v1328_v7  ;;  %vm191_vm13 = vcmp.eq.s32.totalorder %v1328_v7, %v1266_v37 }
 0x251   :  { %v1333_v10 = vsel %vm193_vm2, -3.4028235e+38, %v1295_v15 }
 0x252   :  { %195 = vmax.xlane.f32.xlu0 %v1333_v10 }
 0x257   :  { %v403_v8 = vpop.xlane.xlu1 %402 }
 0x258   :  { %v404_v9 = vrot.slane %v403_v8, 4 }
 0x25a   :  { %v405_v11 = vadd.f32 %v404_v9, %v403_v8 }
 0x25c   :  { %v406_v12 = vrot.slane %v405_v11, 2 }
 0x25e   :  { %v407_v13 = vadd.f32 %v406_v12, %v405_v11  ;;  %v1174_v12 = vmov 0.0  }
 0x260   :  { %v408_v14 = vrot.slane %v407_v13, 1 }
 0x262   :  { %v409_v16 = vadd.f32 %v408_v14, %v407_v13  ;;  %v192_v13 = vsel %vm191_vm13, 1.0, %v1174_v12 }
 0x264   :  { %1080 = vpush %v409_v16 }
 0x295   :  { %s1081_s28 = spop %1080 }
 0x296   :  { %v411_v17 = vstv %s1081_s28 }
 0x297   :  { %1099 = vrsqrt.f32 %v411_v17  ;;  %vm418_vm3 = vweird.f32 %v411_v17 }
 0x29d   :  { %v1100_v18 = vpop.eup %1099 }
 0x29e   :  { %v413_v19 = vmul.f32 %v1100_v18, %v411_v17  ;;  %vm419_vm4 = vweird.f32 %v1100_v18 }
 0x29f   :  { %vm420_vm5 = vmor %vm418_vm3, %vm419_vm4 }
 0x2a0   :  { %v414_v20 = vmul.f32 %v1100_v18, %v413_v19 }
 0x2a2   :  { %v415_v21 = vmul.f32 0.5, %v414_v20 }
 0x2a4   :  { %v416_v22 = vsub.f32 1.5, %v415_v21 }
 0x2a6   :  { %v417_v23 = vmul.f32 %v1100_v18, %v416_v22 }
 0x2a8   :  { %v421_v24 = vsel %vm420_vm5, %v1100_v18, %v417_v23 }
 0x2a9   :  { %v422_v25 = vmul.f32 %v421_v24, %v399_v0 }
 0x2ab   :  { %423 = vst [vmem:[%s395_s2] sm:$0x1] %v422_v25 }
 0x2b2   :  { %v427_v28 = vld [vmem:[%s426_s7] sm:$0x1] }
 0x2b3   :  { %v428_v29 = vmul.f32 %v427_v28, %v1280_v39 }
 0x2b5   :  { %v430_v30 = vadd.f32 %v429_v27, %v428_v29 }
 0x2b7   :  { %v431_v31 = vmul.f32 %v430_v30, %v430_v30 }
 0x2b9   :  { %v432_v34 = vsel %vm338_vm9, %v431_v31, 0.0 }
 0x2ba   :  { %433 = vadd.xlane.f32.xlu1 %v432_v34 }
 0x2c5   :  { %v1349_v35 = vpop.xlane.xlu0 %195 }
 0x2c6   :  { %vm197_vm6 = vcmp.eq.f32.partialorder %v1333_v10, %v1349_v35 }
 0x2c7   :  { %v198_v36 = vsel %vm197_vm6, %v1264_v32, 128 }
 0x2c8   :  { %v200_v40 = vshra.s32 %v198_v36, 16  ;;  %v199_v49 = vand.u32 65535, %v198_v36 }
 0x2ca   :  { %v202_v41 = vcvt.s32.f32 %v200_v40  ;;  %v201_v51 = vcvt.s32.f32 %v199_v49 }
 0x2cc   :  { %203 = vmin.xlane.f32.xlu2 %v202_v41 }
 0x32d   :  { %v434_v42 = vpop.xlane.xlu1 %433 }
 0x32e   :  { %v435_v43 = vrot.slane %v434_v42, 4 }
 0x330   :  { %v436_v44 = vadd.f32 %v435_v43, %v434_v42 }
 0x332   :  { %v437_v45 = vrot.slane %v436_v44, 2 }
 0x334   :  { %v438_v46 = vadd.f32 %v437_v45, %v436_v44 }
 0x336   :  { %v439_v47 = vrot.slane %v438_v46, 1 }
 0x338   :  { %v440_v48 = vadd.f32 %v439_v47, %v438_v46 }
 0x33a   :  { %1082 = vpush %v440_v48 }
 0x33f   :  { %v204_v50 = vpop.xlane.xlu2 %203 }
 0x340   :  { %vm205_vm7 = vcmp.eq.f32.partialorder %v202_v41, %v204_v50  ;;  %v210_v5 = vcvt.f32.s32 %v204_v50  ;;  %v487_v41 = vld [vmem:[%s1482_s0 + $0x5] sm:$0x1] }
 0x341   :  { %v206_v52 = vsel %vm205_vm7, %v201_v51, inf  ;;  %v491_v42 = vmul.f32 %v487_v41, %v1275_v38 }
 0x342   :  { %207 = vmin.xlane.f32.xlu0 %v206_v52  ;;  %v211_v8 = vshll.u32 %v210_v5, 16 }
 0x36b   :  { %s1083_s1 = spop %1082 }
 0x36c   :  { %v442_v53 = vstv %s1083_s1 }
 0x36d   :  { %1101 = vrsqrt.f32 %v442_v53  ;;  %vm449_vm11 = vweird.f32 %v442_v53 }
 0x373   :  { %v1102_v54 = vpop.eup %1101 }
 0x374   :  { %v444_v55 = vmul.f32 %v1102_v54, %v442_v53  ;;  %vm450_vm10 = vweird.f32 %v1102_v54 }
 0x375   :  { %vm451_vm12 = vmor %vm449_vm11, %vm450_vm10 }
 0x376   :  { %v445_v56 = vmul.f32 %v1102_v54, %v444_v55 }
 0x378   :  { %v446_v57 = vmul.f32 0.5, %v445_v56 }
 0x37a   :  { %v447_v58 = vsub.f32 1.5, %v446_v57 }
 0x37c   :  { %v448_v59 = vmul.f32 %v1102_v54, %v447_v58 }
 0x37e   :  { %v452_v60 = vsel %vm451_vm12, %v1102_v54, %v448_v59 }
 0x37f   :  { %v453_v61 = vmul.f32 %v452_v60, %v430_v30 }
 0x381   :  { %454 = vst [vmem:[%s426_s7] sm:$0x1] %v453_v61 }
 0x388   :  { %v458_v0 = vld [vmem:[%s457_s11] sm:$0x1] }
 0x389   :  { %v459_v1 = vmul.f32 %v458_v0, %v1280_v39 }
 0x38b   :  { %v461_v2 = vadd.f32 %v460_v63, %v459_v1 }
 0x38d   :  { %v462_v3 = vmul.f32 %v461_v2, %v461_v2 }
 0x38f   :  { %v463_v4 = vsel %vm338_vm9, %v462_v3, 0.0 }
 0x390   :  { %464 = vadd.xlane.f32.xlu2 %v463_v4 }
 0x3b5   :  { %v208_v6 = vpop.xlane.xlu0 %207 }
 0x3b6   :  { %v209_v9 = vcvt.f32.s32 %v208_v6 }
 0x3b8   :  { %v212_v11 = vadd.s32 %v211_v8, %v209_v9 }
 0x3ba   :  { %vm214_vm14 = vcmp.eq.s32.totalorder %v212_v11, %v1266_v37  ;;  %vm216_vm15 = vcmp.eq.s32.totalorder %v1264_v32, %v212_v11 }
 0x3bb   :  { %v1371_v14 = vsel %vm214_vm14, 1.0, %v192_v13  ;;  %v1374_v16 = vsel %vm216_vm15, -3.4028235e+38, %v1333_v10  ;;  %v518_v13 = vld [vmem:[%s1482_s0 + $0x6] sm:$0x1] }
 0x3bc   :  { %218 = vmax.xlane.f32.xlu1 %v1374_v16 }
 0x403   :  { %v465_v17 = vpop.xlane.xlu2 %464 }
 0x404   :  { %v466_v18 = vrot.slane %v465_v17, 4 }
 0x406   :  { %v467_v19 = vadd.f32 %v466_v18, %v465_v17 }
 0x408   :  { %v468_v20 = vrot.slane %v467_v19, 2 }
 0x40a   :  { %v469_v21 = vadd.f32 %v468_v20, %v467_v19  ;;  %v522_v19 = vmul.f32 %v518_v13, %v1275_v38 }
 0x40c   :  { %v470_v7 = vrot.slane %v469_v21, 1 }
 0x40e   :  { %v471_v22 = vadd.f32 %v470_v7, %v469_v21 }
 0x410   :  { %1084 = vpush %v471_v22 }
 0x42f   :  { %v1377_v23 = vpop.xlane.xlu1 %218 }
 0x430   :  { %vm220_vm0 = vcmp.eq.f32.partialorder %v1374_v16, %v1377_v23 }
 0x431   :  { %v221_v24 = vsel %vm220_vm0, %v1264_v32, 128 }
 0x432   :  { %v223_v25 = vshra.s32 %v221_v24, 16  ;;  %v222_v48 = vand.u32 65535, %v221_v24 }
 0x434   :  { %v225_v10 = vcvt.s32.f32 %v223_v25  ;;  %v224_v50 = vcvt.s32.f32 %v222_v48 }
 0x436   :  { %226 = vmin.xlane.f32.xlu0 %v225_v10 }
 0x441   :  { %s1085_s12 = spop %1084 }
 0x442   :  { %v473_v26 = vstv %s1085_s12 }
 0x443   :  { %1103 = vrsqrt.f32 %v473_v26  ;;  %vm480_vm2 = vweird.f32 %v473_v26 }
 0x449   :  { %v1104_v27 = vpop.eup %1103 }
 0x44a   :  { %v475_v28 = vmul.f32 %v1104_v27, %v473_v26  ;;  %vm481_vm1 = vweird.f32 %v1104_v27 }
 0x44b   :  { %vm482_vm3 = vmor %vm480_vm2, %vm481_vm1 }
 0x44c   :  { %v476_v29 = vmul.f32 %v1104_v27, %v475_v28 }
 0x44e   :  { %v477_v30 = vmul.f32 0.5, %v476_v29 }
 0x450   :  { %v478_v31 = vsub.f32 1.5, %v477_v30 }
 0x452   :  { %v479_v34 = vmul.f32 %v1104_v27, %v478_v31 }
 0x454   :  { %v483_v36 = vsel %vm482_vm3, %v1104_v27, %v479_v34 }
 0x455   :  { %v484_v40 = vmul.f32 %v483_v36, %v461_v2 }
 0x457   :  { %485 = vst [vmem:[%s457_s11] sm:$0x1] %v484_v40 }
 0x45e   :  { %v489_v43 = vld [vmem:[%s488_s17] sm:$0x1] }
 0x45f   :  { %v490_v44 = vmul.f32 %v489_v43, %v1280_v39 }
 0x461   :  { %v492_v45 = vadd.f32 %v491_v42, %v490_v44 }
 0x463   :  { %v493_v46 = vmul.f32 %v492_v45, %v492_v45 }
 0x465   :  { %v494_v47 = vsel %vm338_vm9, %v493_v46, 0.0 }
 0x466   :  { %495 = vadd.xlane.f32.xlu0 %v494_v47 }
 0x4a9   :  { %v227_v49 = vpop.xlane.xlu0 %226 }
 0x4aa   :  { %vm228_vm4 = vcmp.eq.f32.partialorder %v225_v10, %v227_v49  ;;  %v233_v63 = vcvt.f32.s32 %v227_v49 }
 0x4ab   :  { %v229_v51 = vsel %vm228_vm4, %v224_v50, inf }
 0x4ac   :  { %230 = vmin.xlane.f32.xlu1 %v229_v51  ;;  %v234_v3 = vshll.u32 %v233_v63, 16 }
 0x4d9   :  { %v496_v52 = vpop.xlane.xlu0 %495 }
 0x4da   :  { %v497_v53 = vrot.slane %v496_v52, 4 }
 0x4dc   :  { %v498_v54 = vadd.f32 %v497_v53, %v496_v52 }
 0x4de   :  { %v499_v55 = vrot.slane %v498_v54, 2 }
 0x4e0   :  { %v500_v56 = vadd.f32 %v499_v55, %v498_v54 }
 0x4e2   :  { %v501_v57 = vrot.slane %v500_v56, 1 }
 0x4e4   :  { %v502_v58 = vadd.f32 %v501_v57, %v500_v56  ;;  %v549_v57 = vld [vmem:[%s1482_s0 + $0x7] sm:$0x1] }
 0x4e6   :  { %1086 = vpush %v502_v58 }
 0x517   :  { %s1087_s18 = spop %1086 }
 0x518   :  { %v504_v59 = vstv %s1087_s18 }
 0x519   :  { %1105 = vrsqrt.f32 %v504_v59  ;;  %vm511_vm6 = vweird.f32 %v504_v59 }
 0x51f   :  { %v1106_v60 = vpop.eup %1105  ;;  %v231_v2 = vpop.xlane.xlu1 %230 }
 0x520   :  { %v506_v61 = vmul.f32 %v1106_v60, %v504_v59  ;;  %vm512_vm5 = vweird.f32 %v1106_v60  ;;  %v232_v4 = vcvt.f32.s32 %v231_v2 }
 0x521   :  { %vm513_vm7 = vmor %vm511_vm6, %vm512_vm5 }
 0x522   :  { %v507_v62 = vmul.f32 %v1106_v60, %v506_v61  ;;  %v235_v6 = vadd.s32 %v234_v3, %v232_v4 }
 0x524   :  { %v508_v0 = vmul.f32 0.5, %v507_v62  ;;  %vm237_vm10 = vcmp.eq.s32.totalorder %v235_v6, %v1266_v37  ;;  %vm239_vm11 = vcmp.eq.s32.totalorder %v1264_v32, %v235_v6  ;;  %v553_v62 = vmul.f32 %v549_v57, %v1275_v38 }
 0x525   :  { %v238_v11 = vsel %vm237_vm10, 1.0, %v1371_v14  ;;  %v240_v12 = vsel %vm239_vm11, -3.4028235e+38, %v1374_v16 }
 0x526   :  { %v509_v1 = vsub.f32 1.5, %v508_v0  ;;  %241 = vmax.xlane.f32.xlu2 %v240_v12 }
 0x528   :  { %v510_v5 = vmul.f32 %v1106_v60, %v509_v1 }
 0x52a   :  { %v514_v8 = vsel %vm513_vm7, %v1106_v60, %v510_v5 }
 0x52b   :  { %v515_v9 = vmul.f32 %v514_v8, %v492_v45 }
 0x52d   :  { %516 = vst [vmem:[%s488_s17] sm:$0x1] %v515_v9 }
 0x534   :  { %v520_v17 = vld [vmem:[%s519_s22] sm:$0x1] }
 0x535   :  { %v521_v16 = vmul.f32 %v520_v17, %v1280_v39 }
 0x537   :  { %v523_v7 = vadd.f32 %v522_v19, %v521_v16 }
 0x539   :  { %v524_v22 = vmul.f32 %v523_v7, %v523_v7 }
 0x53b   :  { %v525_v24 = vsel %vm338_vm9, %v524_v22, 0.0 }
 0x599   :  { %v1409_v18 = vpop.xlane.xlu2 %241 }
 0x59a   :  { %vm243_vm12 = vcmp.eq.f32.partialorder %v240_v12, %v1409_v18 }
 0x59b   :  { %v244_v14 = vsel %vm243_vm12, %v1264_v32, 128 }
 0x59c   :  { %v246_v20 = vshra.s32 %v244_v14, 16  ;;  %v245_v25 = vand.u32 65535, %v244_v14 }
 0x59e   :  { %v248_v21 = vcvt.s32.f32 %v246_v20  ;;  %v247_v26 = vcvt.s32.f32 %v245_v25 }
 0x5a0   :  { %249 = vmin.xlane.f32.xlu1 %v248_v21 }
 0x5a8   :  { %526 = vadd.xlane.f32.xlu1 %v525_v24 }
 0x613   :  { %v250_v10 = vpop.xlane.xlu1 %249 }
 0x614   :  { %vm251_vm13 = vcmp.eq.f32.partialorder %v248_v21, %v250_v10  ;;  %v256_v50 = vcvt.f32.s32 %v250_v10 }
 0x615   :  { %v252_v27 = vsel %vm251_vm13, %v247_v26, inf  ;;  %vm324_vm13 = vcmask 0  }
 0x616   :  { %253 = vmin.xlane.f32.xlu2 %v252_v27  ;;  %v257_v52 = vshll.u32 %v256_v50, 16  ;;  %v163_v27 = vsub.f32 %v1295_v15, %v1310_v33 }
 0x61b   :  { %v527_v28 = vpop.xlane.xlu1 %526 }
 0x61c   :  { %v528_v29 = vrot.slane %v527_v28, 4 }
 0x61e   :  { %v529_v30 = vadd.f32 %v528_v29, %v527_v28 }
 0x620   :  { %v530_v31 = vrot.slane %v529_v30, 2 }
 0x622   :  { %v531_v34 = vadd.f32 %v530_v31, %v529_v30 }
 0x624   :  { %v532_v36 = vrot.slane %v531_v34, 1 }
 0x626   :  { %v533_v40 = vadd.f32 %v532_v36, %v531_v34  ;;  %v164_v34 = vmul.f32 1.442695, %v163_v27 }
 0x628   :  { %1088 = vpush %v533_v40 }
 0x659   :  { %s1089_s23 = spop %1088 }
 0x65a   :  { %v535_v41 = vstv %s1089_s23 }
 0x65b   :  { %1107 = vrsqrt.f32 %v535_v41  ;;  %vm542_vm15 = vweird.f32 %v535_v41 }
 0x661   :  { %v1108_v42 = vpop.eup %1107 }
 0x662   :  { %v537_v43 = vmul.f32 %v1108_v42, %v535_v41  ;;  %vm543_vm14 = vweird.f32 %v1108_v42 }
 0x663   :  { %vm544_vm0 = vmor %vm542_vm15, %vm543_vm14 }
 0x664   :  { %v538_v44 = vmul.f32 %v1108_v42, %v537_v43 }
 0x666   :  { %v539_v45 = vmul.f32 0.5, %v538_v44 }
 0x668   :  { %v540_v46 = vsub.f32 1.5, %v539_v45 }
 0x66a   :  { %v541_v47 = vmul.f32 %v1108_v42, %v540_v46  ;;  %v171_v46 = vsel %vm120_vm8, %v1295_v15, 0.0 }
 0x66c   :  { %v545_v48 = vsel %vm544_vm0, %v1108_v42, %v541_v47 }
 0x66d   :  { %v546_v49 = vmul.f32 %v545_v48, %v523_v7 }
 0x66f   :  { %547 = vst [vmem:[%s519_s22] sm:$0x1] %v546_v49 }
 0x676   :  { %v551_v58 = vld [vmem:[%s550_s27] sm:$0x1] }
 0x677   :  { %v552_v61 = vmul.f32 %v551_v58, %v1280_v39 }
 0x679   :  { %v554_v1 = vadd.f32 %v553_v62, %v552_v61 }
 0x67b   :  { %v555_v2 = vmul.f32 %v554_v1, %v554_v1 }
 0x67d   :  { %v556_v3 = vsel %vm338_vm9, %v555_v2, 0.0 }
 0x689   :  { %v254_v51 = vpop.xlane.xlu2 %253 }
 0x68a   :  { %v255_v53 = vcvt.f32.s32 %v254_v51 }
 0x68c   :  { %v258_v54 = vadd.s32 %v257_v52, %v255_v53 }
 0x68e   :  { %vm260_vm1 = vcmp.eq.s32.totalorder %v258_v54, %v1266_v37  ;;  %vm262_vm2 = vcmp.eq.s32.totalorder %v1264_v32, %v258_v54  ;;  %v213_v54 = vadd.f32 %v1349_v35, %v1310_v33 }
 0x68f   :  { %v263_v55 = vsel %vm262_vm2, -3.4028235e+38, %v240_v12  ;;  %v261_v56 = vsel %vm260_vm1, 1.0, %v238_v11 }
 0x690   :  { %264 = vmax.xlane.f32.xlu0 %v263_v55 }
 0x703   :  { %v1428_v59 = vpop.xlane.xlu0 %264 }
 0x704   :  { %vm266_vm3 = vcmp.eq.f32.partialorder %v263_v55, %v1428_v59 }
 0x705   :  { %v267_v60 = vsel %vm266_vm3, %v1264_v32, 128 }
 0x706   :  { %v269_v63 = vshra.s32 %v267_v60, 16  ;;  %v268_v4 = vand.u32 65535, %v267_v60 }
 0x708   :  { %v271_v0 = vcvt.s32.f32 %v269_v63  ;;  %v270_v6 = vcvt.s32.f32 %v268_v4 }
 0x70a   :  { %272 = vmin.xlane.f32.xlu2 %v271_v0 }
 0x712   :  { %557 = vadd.xlane.f32.xlu2 %v556_v3 }
 0x77d   :  { %v273_v5 = vpop.xlane.xlu2 %272 }
 0x77e   :  { %vm274_vm4 = vcmp.eq.f32.partialorder %v271_v0, %v273_v5  ;;  %v279_v26 = vcvt.f32.s32 %v273_v5 }
 0x77f   :  { %v275_v8 = vsel %vm274_vm4, %v270_v6, inf }
 0x780   :  { %276 = vmin.xlane.f32.xlu0 %v275_v8  ;;  %v280_v29 = vshll.u32 %v279_v26, 16 }
 0x785   :  { %v558_v9 = vpop.xlane.xlu2 %557 }
 0x786   :  { %v559_v11 = vrot.slane %v558_v9, 4 }
 0x788   :  { %v560_v12 = vadd.f32 %v559_v11, %v558_v9 }
 0x78a   :  { %v561_v39 = vrot.slane %v560_v12, 2 }
 0x78c   :  { %v562_v13 = vadd.f32 %v561_v39, %v560_v12 }
 0x78e   :  { %v563_v38 = vrot.slane %v562_v13, 1 }
 0x790   :  { %v564_v17 = vadd.f32 %v563_v38, %v562_v13 }
 0x792   :  { %1090 = vpush %v564_v17 }
 0x7c3   :  { %s1091_s0 = spop %1090 }
 0x7c4   :  { %v566_v14 = vstv %s1091_s0 }
 0x7c5   :  { %1109 = vrsqrt.f32 %v566_v14  ;;  %vm573_vm5 = vweird.f32 %v566_v14 }
 0x7c6   :  { %1111 = vpow2.f32 %v164_v34 }
 0x7cb   :  { %v1110_v16 = vpop.eup %1109 }
 0x7cc   :  { %v568_v19 = vmul.f32 %v1110_v16, %v566_v14  ;;  %vm574_vm9 = vweird.f32 %v1110_v16  ;;  %v1112_v41 = vpop.eup %1111 }
 0x7cd   :  { %vm575_vm6 = vmor %vm573_vm5, %vm574_vm9 }
 0x7ce   :  { %v569_v20 = vmul.f32 %v1110_v16, %v568_v19 }
 0x7d0   :  { %v570_v21 = vmul.f32 0.5, %v569_v20 }
 0x7d2   :  { %v571_v7 = vsub.f32 1.5, %v570_v21 }
 0x7d4   :  { %v572_v22 = vmul.f32 %v1110_v16, %v571_v7 }
 0x7d6   :  { %v576_v24 = vsel %vm575_vm6, %v1110_v16, %v572_v22 }
 0x7d7   :  { %v577_v25 = vmul.f32 %v576_v24, %v554_v1 }
 0x7d9   :  { %578 = vst [vmem:[%s550_s27] sm:$0x1] %v577_v25 }
 0x7e0   :  { %v596_v10 = vld [vmem:[%s1286_s19] sm:$0x1] }
 0x7e1   :  { %597 = vst [vmem:[%s581_s29] sm:$0x1] %v596_v10 }
 0x7f3   :  { %v277_v28 = vpop.xlane.xlu0 %276 }
 0x7f4   :  { %v278_v30 = vcvt.f32.s32 %v277_v28 }
 0x7f6   :  { %v281_v31 = vadd.s32 %v280_v29, %v278_v30 }
 0x7f8   :  { %vm283_vm7 = vcmp.eq.s32.totalorder %v281_v31, %v1266_v37  ;;  %vm285_vm10 = vcmp.eq.s32.totalorder %v1264_v32, %v281_v31 }
 0x7f9   :  { %v286_v36 = vsel %vm285_vm10, -3.4028235e+38, %v263_v55  ;;  %v284_v40 = vsel %vm283_vm7, 1.0, %v261_v56  ;;  %v236_v56 = vadd.f32 %v1377_v23, %v213_v54 }
 0x7fa   :  { %287 = vmax.xlane.f32.xlu1 %v286_v36 }
 0x7fb   :  { %v259_v57 = vadd.f32 %v1409_v18, %v236_v56 }
 0x7fd   :  { %v282_v61 = vadd.f32 %v1428_v59, %v259_v57 }
 0x802   :  { %166 = vadd.xlane.f32.xlu1 %v1112_v41 }
 0x86d   :  { %v288_v42 = vpop.xlane.xlu1 %287 }
 0x86e   :  { %vm289_vm11 = vcmp.eq.f32.partialorder %v286_v36, %v288_v42  ;;  %v305_v0 = vadd.f32 %v288_v42, %v282_v61 }
 0x86f   :  { %v290_v43 = vsel %vm289_vm11, %v1264_v32, 128 }
 0x870   :  { %v292_v44 = vshra.s32 %v290_v43, 16  ;;  %v291_v47 = vand.u32 65535, %v290_v43 }
 0x872   :  { %v294_v45 = vcvt.s32.f32 %v292_v44  ;;  %v293_v49 = vcvt.s32.f32 %v291_v47 }
 0x874   :  { %295 = vmin.xlane.f32.xlu0 %v294_v45 }
 0x875   :  { %v167_v51 = vpop.xlane.xlu1 %166 }
 0x876   :  { %1113 = vlog2.f32 %v167_v51 }
 0x87c   :  { %172 = vadd.xlane.f32.xlu0 %v171_v46  ;;  %v1114_v52 = vpop.eup %1113 }
 0x87d   :  { %v169_v53 = vmul.f32 0.6931472, %v1114_v52 }
 0x87f   :  { %v170_v32 = vadd.f32 %v169_v53, %v1310_v33 }
 0x881   :  { %v309_v62 = vmul.f32 6.0, %v170_v32 }
 0x883   :  { %v310_v35 = vsub.f32 %v305_v0, %v309_v62 }
 0x885   :  { %v311_v5 = vmul.f32 2.0, %v310_v35 }
 0x8e7   :  { %v296_v48 = vpop.xlane.xlu0 %295 }
 0x8e8   :  { %vm297_vm12 = vcmp.eq.f32.partialorder %v294_v45, %v296_v48  ;;  %v302_v55 = vcvt.f32.s32 %v296_v48 }
 0x8e9   :  { %v298_v50 = vsel %vm297_vm12, %v293_v49, inf }
 0x8ea   :  { %299 = vmin.xlane.f32.xlu2 %v298_v50  ;;  %v303_v58 = vshll.u32 %v302_v55, 16 }
 0x8ef   :  { %v173_v1 = vpop.xlane.xlu0 %172 }
 0x8f0   :  { %v308_v4 = vsub.f32 %v173_v1, %v170_v32 }
 0x95d   :  { %v300_v15 = vpop.xlane.xlu2 %299 }
 0x95e   :  { %v301_v60 = vcvt.f32.s32 %v300_v15 }
 0x960   :  { %v304_v63 = vadd.s32 %v303_v58, %v301_v60 }
 0x962   :  { %vm306_vm8 = vcmp.eq.s32.totalorder %v304_v63, %v1266_v37 }
 0x963   :  { %v307_v2 = vsel %vm306_vm8, 1.0, %v284_v40 }
 0x964   :  { %v312_v3 = vmul.f32 2.0, %v307_v2 }
 0x966   :  { %v313_v23 = vsub.f32 3.0, %v312_v3 }
 0x968   :  { %v314_v33 = vmul.f32 %v313_v23, %v308_v4 }
 0x96a   :  { %v315_v6 = vadd.f32 %v314_v33, %v311_v5 }
 0x96c   :  { %v316_v8 = vsub.f32 0.0, %v315_v6 }
 0x96e   :  { %v317_v18 = vrot.slane %v316_v8, 4 }
 0x970   :  { %v318_v9 = vadd.f32 %v317_v18, %v316_v8 }
 0x972   :  { %v319_v11 = vrot.slane %v318_v9, 2 }
 0x974   :  { %v320_v12 = vadd.f32 %v319_v11, %v318_v9 }
 0x976   :  { %v321_v59 = vrot.slane %v320_v12, 1 }
 0x978   :  { %v322_v39 = vadd.f32 %v321_v59, %v320_v12 }
 0x97a   :  { %v323_v13 = vmul.f32 0.125, %v322_v39 }
 0x97c   :  { %325 = vst.msk [vmem:[#allocation8] sm:$0x1] %vm324_vm13, %v323_v13 }
 0x97d   :  { %615 = vsyncadd [#allocation3], 16  ;;  %s1060_s14 = sld [smem:[#allocation5 + $0x1]] }
 0x983   :  { %s618_s6 = scalar_lea.vmem %s1487_s5, %s1060_s14  ;;  %s617_s7 = scalar_lea.vmem [#allocation2], %s1060_s14 }
 0x984   :  { %v634_v37 = vld [vmem:[%s617_s7] sm:$0x1] }
 0x985   :  { %635 = vst [vmem:[%s618_s6] sm:$0x1] %v634_v37 }
 0x986   :  { %653 = vsyncadd [#allocation3 + $0x1], 16  ;;  %s1061_s1 = sld [smem:[#allocation5 + $0x2]] }
 0x98c   :  { %s656_s10 = scalar_lea.vmem %s1487_s5, %s1061_s1  ;;  %s655_s11 = scalar_lea.vmem [#allocation2], %s1061_s1 }
 0x98d   :  { %v672_v38 = vld [vmem:[%s655_s11] sm:$0x1] }
 0x98e   :  { %673 = vst [vmem:[%s656_s10] sm:$0x1] %v672_v38 }
 0x98f   :  { %691 = vsyncadd [#allocation3 + $0x2], 16  ;;  %s1062_s12 = sld [smem:[#allocation5 + $0x3]] }
 0x995   :  { %s694_s16 = scalar_lea.vmem %s1487_s5, %s1062_s12  ;;  %s693_s17 = scalar_lea.vmem [#allocation2], %s1062_s12 }
 0x996   :  { %v710_v17 = vld [vmem:[%s693_s17] sm:$0x1] }
 0x997   :  { %711 = vst [vmem:[%s694_s16] sm:$0x1] %v710_v17 }
 0x998   :  { %729 = vsyncadd [#allocation3 + $0x3], 16  ;;  %s1063_s18 = sld [smem:[#allocation5 + $0x4]] }
 0x99e   :  { %s732_s21 = scalar_lea.vmem %s1487_s5, %s1063_s18  ;;  %s731_s22 = scalar_lea.vmem [#allocation2], %s1063_s18 }
 0x99f   :  { %v748_v14 = vld [vmem:[%s731_s22] sm:$0x1] }
 0x9a0   :  { %749 = vst [vmem:[%s732_s21] sm:$0x1] %v748_v14 }
 0x9a1   :  { %767 = vsyncadd [#allocation3 + $0x4], 16  ;;  %s1064_s23 = sld [smem:[#allocation5 + $0x5]] }
 0x9a7   :  { %s770_s26 = scalar_lea.vmem %s1487_s5, %s1064_s23  ;;  %s769_s27 = scalar_lea.vmem [#allocation2], %s1064_s23 }
 0x9a8   :  { %v786_v16 = vld [vmem:[%s769_s27] sm:$0x1] }
 0x9a9   :  { %787 = vst [vmem:[%s770_s26] sm:$0x1] %v786_v16 }
 0x9aa   :  { %805 = vsyncadd [#allocation3 + $0x5], 16  ;;  %s1065_s0 = sld [smem:[#allocation5 + $0x6]] }
 0x9b0   :  { %s808_s29 = scalar_lea.vmem %s1487_s5, %s1065_s0  ;;  %s807_s14 = scalar_lea.vmem [#allocation2], %s1065_s0 }
 0x9b1   :  { %v824_v19 = vld [vmem:[%s807_s14] sm:$0x1] }
 0x9b2   :  { %825 = vst [vmem:[%s808_s29] sm:$0x1] %v824_v19 }
 0x9b3   :  { %843 = vsyncadd [#allocation3 + $0x6], 16  ;;  %s1066_s19 = sld [smem:[#allocation5 + $0x7]] }
 0x9b9   :  { %s846_s7 = scalar_lea.vmem %s1487_s5, %s1066_s19  ;;  %s845_s1 = scalar_lea.vmem [#allocation2], %s1066_s19 }
 0x9ba   :  { %v862_v20 = vld [vmem:[%s845_s1] sm:$0x1] }
 0x9bb   :  { %863 = vst [vmem:[%s846_s7] sm:$0x1] %v862_v20 }
 0x9bc   :  { %881 = vsyncadd [#allocation3 + $0x7], 16 }
 0x9bd   :  { %1155 = dma.done.wait [#allocation3], 16 }
 0x9be   :  { %1156 = vsyncadd [#allocation3], 4294967280 }
 0x9bf   :  { %1157 = dma.done.wait [#allocation3 + $0x1], 16 }
 0x9c0   :  { %1158 = vsyncadd [#allocation3 + $0x1], 4294967280 }
 0x9c1   :  { %1159 = dma.done.wait [#allocation3 + $0x2], 16 }
 0x9c2   :  { %1160 = vsyncadd [#allocation3 + $0x2], 4294967280 }
 0x9c3   :  { %1161 = dma.done.wait [#allocation3 + $0x3], 16 }
 0x9c4   :  { %1162 = vsyncadd [#allocation3 + $0x3], 4294967280 }
 0x9c5   :  { %1163 = dma.done.wait [#allocation3 + $0x4], 16 }
 0x9c6   :  { %1164 = vsyncadd [#allocation3 + $0x4], 4294967280 }
 0x9c7   :  { %1165 = dma.done.wait [#allocation3 + $0x5], 16 }
 0x9c8   :  { %1166 = vsyncadd [#allocation3 + $0x5], 4294967280 }
 0x9c9   :  { %1167 = dma.done.wait [#allocation3 + $0x6], 16 }
 0x9ca   :  { %1168 = vsyncadd [#allocation3 + $0x6], 4294967280 }
 0x9cb   :  { %1169 = dma.done.wait [#allocation3 + $0x7], 16 }
 0x9cc   :  { %1170 = vsyncadd [#allocation3 + $0x7], 4294967280  ;;  %s914_s9 = sshll.u32 %s1486_s4, 4  ;;  %s1175_s10 = smov [#allocation8]   ;;  %s915_s9 = int_to_ptr.hbm [resolvable:$true] %s914_s9 }
 0x9cd   :  { %s912_s11 = sshll.u32 %s1175_s10, 4  ;;  %s913_s11 = int_to_ptr.vmem [resolvable:$true] %s912_s11 }
 0x9ce   :  { %917 = dma.vmem_to_hbm [thread:$0]  %s913_s11, 16, %s915_s9, [#allocation6]  }
 0x9cf   :  { %1171 = dma.done.wait [#allocation6], 16  }
 0x9d0   :  { %1172 = vsyncadd [#allocation6], 4294967280 }
 0x9d1   :  { %922 = vsyncpa [#allocation6], 1 }
 0x9d2   :  { %923 = vsyncpa [#allocation7], 1 }
 0x9d3   :  { %924 = vsyncmov [#allocation3] }
 0x9d6   :  { %s925_s12 = vpop.sfrf %924 }
 0x9d7   :  { %p1067_p0 = scmp.ne.s32.totalorder %s925_s12, 0 }
 0x9d9   :  { %929 = shalt.err (%p1067_p0)  }
 0x9da   :  { %931 = vsyncmov [#allocation3 + $0x1] }
 0x9dd   :  { %s932_s13 = vpop.sfrf %931 }
 0x9de   :  { %p1068_p1 = scmp.ne.s32.totalorder %s932_s13, 0 }
 0x9e0   :  { %936 = shalt.err (%p1068_p1)  }
 0x9e1   :  { %938 = vsyncmov [#allocation3 + $0x2] }
 0x9e4   :  { %s939_s15 = vpop.sfrf %938 }
 0x9e5   :  { %p1069_p2 = scmp.ne.s32.totalorder %s939_s15, 0 }
 0x9e7   :  { %943 = shalt.err (%p1069_p2)  }
 0x9e8   :  { %945 = vsyncmov [#allocation3 + $0x3] }
 0x9eb   :  { %s946_s4 = vpop.sfrf %945 }
 0x9ec   :  { %p1070_p3 = scmp.ne.s32.totalorder %s946_s4, 0 }
 0x9ee   :  { %950 = shalt.err (%p1070_p3)  }
 0x9ef   :  { %952 = vsyncmov [#allocation3 + $0x4] }
 0x9f2   :  { %s953_s16 = vpop.sfrf %952 }
 0x9f3   :  { %p1071_p4 = scmp.ne.s32.totalorder %s953_s16, 0 }
 0x9f5   :  { %957 = shalt.err (%p1071_p4)  }
 0x9f6   :  { %959 = vsyncmov [#allocation3 + $0x5] }
 0x9f9   :  { %s960_s17 = vpop.sfrf %959 }
 0x9fa   :  { %p1072_p5 = scmp.ne.s32.totalorder %s960_s17, 0 }
 0x9fc   :  { %964 = shalt.err (%p1072_p5)  }
 0x9fd   :  { %966 = vsyncmov [#allocation3 + $0x6] }
 0xa00   :  { %s967_s18 = vpop.sfrf %966 }
 0xa01   :  { %p1073_p6 = scmp.ne.s32.totalorder %s967_s18, 0 }
 0xa03   :  { %971 = shalt.err (%p1073_p6)  }
 0xa04   :  { %973 = vsyncmov [#allocation3 + $0x7] }
 0xa07   :  { %s974_s3 = vpop.sfrf %973 }
 0xa08   :  { %p1074_p7 = scmp.ne.s32.totalorder %s974_s3, 0 }
 0xa0a   :  { %978 = shalt.err (%p1074_p7)  }
 0xa0b   :  { %980 = vsyncmov [#allocation3 + $0x8] }
 0xa0e   :  { %s981_s20 = vpop.sfrf %980 }
 0xa0f   :  { %p1075_p8 = scmp.ne.s32.totalorder %s981_s20, 0 }
 0xa11   :  { %985 = shalt.err (%p1075_p8)  }

</bundles_post_ra>
